<compile_context>
chip_gen: v6e
topology: v6e:2x2x1
jax: 0.10.0
libtpu: 0.0.40
codegen_flags: <defaults>
</compile_context>

<pallas_src>
import jax
import jax.numpy as jnp
import numpy as np
from jax.experimental import pallas as pl
from jax.experimental.pallas import tpu as pltpu

N = 2                  # batch
H = W = 28             # MNIST spatial size (required: fc1 expects 28*14*14 inputs)
C_OUT = 28             # conv1 output channels
KK = 9                 # 3x3 kernel taps
POOL_H = POOL_W = 14   # after 2x2/stride-2 max-pool
NPOS = POOL_H * POOL_W          # 196 pooled positions per sample
FLAT = C_OUT * NPOS             # 5488
HID = 100
NCLS = 10


# ---------------------------------------------------------------------------
# Kernel 1: conv3x3 + bias + ReLU + 2x2 max-pool (one MXU matmul + 3 maxima)
# ---------------------------------------------------------------------------
def conv_pool_kernel(patches_ref, wc_ref, bc_ref, out_ref):
    """patches_ref: (4*n*196, 9) bf16, row = tap*(n*196) + sample*196 + pos
       wc_ref:      (9, 28) bf16 conv weight as [dy*3+dx, c_out]
       bc_ref:      (1, 28) f32 conv bias
       out_ref:     (n*196, 28) bf16 pooled activations, row = sample*196 + pos
    """
    t = out_ref.shape[0]                              # n*196 rows per pool tap (mult of 8)

    # One MXU matmul covering all 4 pool taps: (4*t, 9) @ (9, 28) -> (4*t, 28), f32 acc.
    r = jnp.dot(patches_ref[...], wc_ref[...], preferred_element_type=jnp.float32)

    # 2x2 max-pool = 3 VPU maxima over sublane-aligned t-row blocks.
    m = jnp.maximum(jnp.maximum(r[0:t], r[t:2 * t]),
                    jnp.maximum(r[2 * t:3 * t], r[3 * t:4 * t]))

    # Bias once (tap-invariant) + ReLU once (commutes with max); emit bf16 for fc1.
    out_ref[...] = jnp.maximum(m + bc_ref[...], 0.0).astype(out_ref.dtype)


# ---------------------------------------------------------------------------
# Kernel 2: fc1 + ReLU + fc2   (dropout is identity in eval mode)
# ---------------------------------------------------------------------------
def fc_kernel(flat_ref, w1_ref, b1_ref, w2_ref, b2_ref, out_ref):
    """flat_ref: (n, 5488) bf16 ; w1_ref: (5488, 100) bf16 ; b1_ref: (1, 100) f32
       w2_ref: (100, 10) bf16 ; b2_ref: (1, 10) f32 ; out_ref: (n, 10) f32
    """
    # TODO(synk): nn.Dropout is identity in eval mode; training-mode random mask omitted.
    h = jnp.dot(flat_ref[...], w1_ref[...], preferred_element_type=jnp.float32) + b1_ref[...]
    h = jnp.maximum(h, 0.0).astype(jnp.bfloat16)
    out_ref[...] = jnp.dot(h, w2_ref[...], preferred_element_type=jnp.float32) + b2_ref[...]


def _vmem_spec():
    return pl.BlockSpec(memory_space=pltpu.MemorySpace.VMEM)


# ---------------------------------------------------------------------------
# One-time parameter preparation (weight permutations + bf16 casts hoisted out
# of the per-call forward).
# ---------------------------------------------------------------------------
def prepare_params(wc, bc, w1, b1, w2, b2):
    wc_mat = wc.reshape(C_OUT, KK).T.astype(jnp.bfloat16)            # (9, 28)
    bc_row = bc.reshape(1, C_OUT).astype(jnp.float32)                # (1, 28)
    # fc1 columns are in PyTorch (c, ho, wo) flatten order -> permute to (ho, wo, c)
    w1k = (w1.T.reshape(C_OUT, POOL_H, POOL_W, HID)
               .transpose(1, 2, 0, 3)
               .reshape(FLAT, HID)
               .astype(jnp.bfloat16))                                # (5488, 100)
    b1_row = b1.reshape(1, HID).astype(jnp.float32)                  # (1, 100)
    w2t = w2.T.astype(jnp.bfloat16)                                  # (100, 10)
    b2_row = b2.reshape(1, NCLS).astype(jnp.float32)                 # (1, 10)
    return wc_mat, bc_row, w1k, b1_row, w2t, b2_row


# ---------------------------------------------------------------------------
# Forward wrapper: slim im2col (sample-major within each pool tap) + 2 kernels.
# ---------------------------------------------------------------------------
@jax.jit
def cnn_forward(x, wc_mat, bc_row, w1k, b1_row, w2t, b2_row):
    """x: (n, 1, 28, 28) float32 NCHW.  Other args come from prepare_params."""
    n = x.shape[0]
    # Cast to bf16 up front so all relayouts move half the bytes.
    xp = jnp.pad(x[:, 0].astype(jnp.bfloat16), ((0, 0), (1, 1), (1, 1)))   # (n, 30, 30)

    # im2col at stride-1 output resolution, then expose the 2x2 pool taps.  Row order:
    #   row = (dh*2+dw)*(n*196) + sample*196 + (ho*14+wo) ;  col = dy*3+dx
    # (sample-major within each tap => pooled output is already row-major (s, pos, c)).
    taps = [xp[:, dy:dy + 2 * POOL_H, dx:dx + 2 * POOL_W]
            for dy in range(3) for dx in range(3)]                   # 9 x (n, 28, 28)
    st = jnp.stack(taps, axis=-1).reshape(n, POOL_H, 2, POOL_W, 2, KK)
    patches = (st.transpose(2, 4, 0, 1, 3, 5)                        # (dh, dw, s, ho, wo, k)
                 .reshape(4 * n * NPOS, KK))                         # (4*n*196, 9) bf16

    # Kernel 1: conv + bias + ReLU + maxpool -> (n*196, 28) bf16.
    pooled = pl.pallas_call(
        conv_pool_kernel,
        out_shape=jax.ShapeDtypeStruct((n * NPOS, C_OUT), jnp.bfloat16),
        in_specs=[_vmem_spec()] * 3,
        out_specs=_vmem_spec(),
    )(patches, wc_mat, bc_row)

    # ~44 KB row-major flatten done by XLA between the two calls (cheap; avoids any
    # in-kernel lane-misaligned relayout).
    flat = pooled.reshape(n, FLAT)                                   # (n, 5488) bf16

    # Kernel 2: fc1 + ReLU + fc2 -> logits.
    out = pl.pallas_call(
        fc_kernel,
        out_shape=jax.ShapeDtypeStruct((n, NCLS), jnp.float32),
        in_specs=[_vmem_spec()] * 5,
        out_specs=_vmem_spec(),
    )(flat, w1k, b1_row, w2t, b2_row)
    return out


# ---------------------------------------------------------------------------
# Deterministic parameter init (PyTorch default-ish uniform(-1/sqrt(fan_in), +))
# ---------------------------------------------------------------------------
def init_params(key):
    ks = jax.random.split(key, 6)

    def uni(k, shape, fan_in):
        b = 1.0 / np.sqrt(fan_in)
        return jax.random.uniform(k, shape, jnp.float32, -b, b)

    wc = uni(ks[0], (C_OUT, 1, 3, 3), 9)         # conv1.weight (OIHW)
    bc = uni(ks[1], (C_OUT,), 9)                 # conv1.bias
    w1 = uni(ks[2], (HID, FLAT), FLAT)           # fc1.weight (out, in)
    b1 = uni(ks[3], (HID,), FLAT)                # fc1.bias
    w2 = uni(ks[4], (NCLS, HID), HID)            # fc2.weight
    b2 = uni(ks[5], (NCLS,), HID)                # fc2.bias
    return wc, bc, w1, b1, w2, b2


# Pure-JAX f32 reference matching the PyTorch forward (eval mode)
def reference(x, wc, bc, w1, b1, w2, b2):
    y = jax.lax.conv_general_dilated(
        x, wc, window_strides=(1, 1), padding=((1, 1), (1, 1)),
        dimension_numbers=("NCHW", "OIHW", "NCHW"))
    y = jnp.maximum(y + bc.reshape(1, C_OUT, 1, 1), 0.0)
    y = jax.lax.reduce_window(y, -jnp.inf, jax.lax.max,
                              (1, 1, 2, 2), (1, 1, 2, 2), "VALID")
    flat = y.reshape(y.shape[0], -1)             # PyTorch NCHW flatten order
    h = jnp.maximum(flat @ w1.T + b1, 0.0)
    return h @ w2.T + b2


if __name__ == "__main__":
    key = jax.random.PRNGKey(0)
    pkey, xkey = jax.random.split(key)
    params = init_params(pkey)
    prepped = prepare_params(*params)            # weight relayout/casts done once
    x = jax.random.normal(xkey, (N, 1, H, W), dtype=jnp.float32)

    out = cnn_forward(x, *prepped)
    out = jax.block_until_ready(out)
    assert out.shape == (N, NCLS)

    # bf16 matmul operands bound accuracy to ~1e-2 relative.
    ref = reference(x, *params)
    np.testing.assert_allclose(np.asarray(out), np.asarray(ref), rtol=1e-2, atol=2e-2)

    print("KERNEL_OK")
</pallas_src>

<mosaic_0001>
module attributes {stable_mosaic.version = 11 : i64} {
  func.func @conv_pool_kernel(%arg0: memref<1568x9xbf16, #tpu.memory_space<vmem>>, %arg1: memref<9x28xbf16, #tpu.memory_space<vmem>>, %arg2: memref<1x28xf32, #tpu.memory_space<vmem>>, %arg3: memref<392x28xbf16, #tpu.memory_space<vmem>>) attributes {dimension_semantics = [], scalar_prefetch = 0 : i64, scratch_operands = 0 : i64, tpu.core_type = #tpu.core_type<tc>} {
    %c0 = arith.constant 0 : index
    %c0_0 = arith.constant 0 : index
    %0 = vector.load %arg0[%c0, %c0_0] : memref<1568x9xbf16, #tpu.memory_space<vmem>>, vector<1568x9xbf16>
    %c0_1 = arith.constant 0 : index
    %c0_2 = arith.constant 0 : index
    %1 = vector.load %arg1[%c0_1, %c0_2] : memref<9x28xbf16, #tpu.memory_space<vmem>>, vector<9x28xbf16>
    %cst = arith.constant dense<0.000000e+00> : vector<1568x28xf32>
    %2 = tpu.matmul %0, %1, %cst {dimension_numbers = #tpu.dot_dimension_numbers<[1], [0], [0], [1], [0, 0, 1, 1], [], []>} : vector<1568x9xbf16>, vector<9x28xbf16>, vector<1568x28xf32> -> vector<1568x28xf32>
    %3 = vector.extract_strided_slice %2 {offsets = [0, 0], sizes = [392, 28], strides = [1, 1]} : vector<1568x28xf32> to vector<392x28xf32>
    %4 = vector.extract_strided_slice %2 {offsets = [392, 0], sizes = [392, 28], strides = [1, 1]} : vector<1568x28xf32> to vector<392x28xf32>
    %5 = arith.maximumf %3, %4 : vector<392x28xf32>
    %6 = vector.extract_strided_slice %2 {offsets = [784, 0], sizes = [392, 28], strides = [1, 1]} : vector<1568x28xf32> to vector<392x28xf32>
    %7 = vector.extract_strided_slice %2 {offsets = [1176, 0], sizes = [392, 28], strides = [1, 1]} : vector<1568x28xf32> to vector<392x28xf32>
    %8 = arith.maximumf %6, %7 : vector<392x28xf32>
    %9 = arith.maximumf %5, %8 : vector<392x28xf32>
    %c0_3 = arith.constant 0 : index
    %c0_4 = arith.constant 0 : index
    %10 = vector.load %arg2[%c0_3, %c0_4] : memref<1x28xf32, #tpu.memory_space<vmem>>, vector<1x28xf32>
    %11 = vector.broadcast %10 : vector<1x28xf32> to vector<392x28xf32>
    %12 = arith.addf %9, %11 : vector<392x28xf32>
    %cst_5 = arith.constant 0.000000e+00 : f32
    %13 = vector.broadcast %cst_5 : f32 to vector<392x28xf32>
    %14 = arith.maximumf %12, %13 : vector<392x28xf32>
    %15 = arith.truncf %14 : vector<392x28xf32> to vector<392x28xbf16>
    %c0_6 = arith.constant 0 : index
    %c0_7 = arith.constant 0 : index
    %16 = vector.load %arg3[%c0_6, %c0_7] : memref<392x28xbf16, #tpu.memory_space<vmem>>, vector<392x28xbf16>
    tpu.vector_store %arg3[%c0_6, %c0_7], %15 {strides = array<i32>} : memref<392x28xbf16, #tpu.memory_space<vmem>>, vector<392x28xbf16>,
    return
  }
}

module attributes {stable_mosaic.version = 11 : i64} {
  func.func @fc_kernel(%arg0: memref<2x5488xbf16, #tpu.memory_space<vmem>>, %arg1: memref<5488x100xbf16, #tpu.memory_space<vmem>>, %arg2: memref<1x100xf32, #tpu.memory_space<vmem>>, %arg3: memref<100x10xbf16, #tpu.memory_space<vmem>>, %arg4: memref<1x10xf32, #tpu.memory_space<vmem>>, %arg5: memref<2x10xf32, #tpu.memory_space<vmem>>) attributes {dimension_semantics = [], scalar_prefetch = 0 : i64, scratch_operands = 0 : i64, tpu.core_type = #tpu.core_type<tc>} {
    %c0 = arith.constant 0 : index
    %c0_0 = arith.constant 0 : index
    %0 = vector.load %arg0[%c0, %c0_0] : memref<2x5488xbf16, #tpu.memory_space<vmem>>, vector<2x5488xbf16>
    %c0_1 = arith.constant 0 : index
    %c0_2 = arith.constant 0 : index
    %1 = vector.load %arg1[%c0_1, %c0_2] : memref<5488x100xbf16, #tpu.memory_space<vmem>>, vector<5488x100xbf16>
    %cst = arith.constant dense<0.000000e+00> : vector<2x100xf32>
    %2 = tpu.matmul %0, %1, %cst {dimension_numbers = #tpu.dot_dimension_numbers<[1], [0], [0], [1], [0, 0, 1, 1], [], []>} : vector<2x5488xbf16>, vector<5488x100xbf16>, vector<2x100xf32> -> vector<2x100xf32>
    %c0_3 = arith.constant 0 : index
    %c0_4 = arith.constant 0 : index
    %3 = vector.load %arg2[%c0_3, %c0_4] : memref<1x100xf32, #tpu.memory_space<vmem>>, vector<1x100xf32>
    %4 = vector.broadcast %3 : vector<1x100xf32> to vector<2x100xf32>
    %5 = arith.addf %2, %4 : vector<2x100xf32>
    %cst_5 = arith.constant 0.000000e+00 : f32
    %6 = vector.broadcast %cst_5 : f32 to vector<2x100xf32>
    %7 = arith.maximumf %5, %6 : vector<2x100xf32>
    %8 = arith.truncf %7 : vector<2x100xf32> to vector<2x100xbf16>
    %c0_6 = arith.constant 0 : index
    %c0_7 = arith.constant 0 : index
    %9 = vector.load %arg3[%c0_6, %c0_7] : memref<100x10xbf16, #tpu.memory_space<vmem>>, vector<100x10xbf16>
    %cst_8 = arith.constant dense<0.000000e+00> : vector<2x10xf32>
    %10 = tpu.matmul %8, %9, %cst_8 {dimension_numbers = #tpu.dot_dimension_numbers<[1], [0], [0], [1], [0, 0, 1, 1], [], []>} : vector<2x100xbf16>, vector<100x10xbf16>, vector<2x10xf32> -> vector<2x10xf32>
    %c0_9 = arith.constant 0 : index
    %c0_10 = arith.constant 0 : index
    %11 = vector.load %arg4[%c0_9, %c0_10] : memref<1x10xf32, #tpu.memory_space<vmem>>, vector<1x10xf32>
    %12 = vector.broadcast %11 : vector<1x10xf32> to vector<2x10xf32>
    %13 = arith.addf %10, %12 : vector<2x10xf32>
    %c0_11 = arith.constant 0 : index
    %c0_12 = arith.constant 0 : index
    %14 = vector.load %arg5[%c0_11, %c0_12] : memref<2x10xf32, #tpu.memory_space<vmem>>, vector<2x10xf32>
    tpu.vector_store %arg5[%c0_11, %c0_12], %13 {strides = array<i32>} : memref<2x10xf32, #tpu.memory_space<vmem>>, vector<2x10xf32>,
    return
  }
}

</mosaic_0001>

<bundles_post_ra>
// kernel: cnn_forward.2
= control target key start
LH: loop header
LB: loop body
LE: loop exit
PB: predicated region body
PF: predicated region fallthrough
CT: control target
= control target key end

     0   :  { %vm1003_vm0 = vcmask 1043456   ;;  %vm1004_vm1 = vcmask 1044480   ;;  %vm708_vm2 = vcmask 72704   ;;  %v3025_v1 = vmov 65535   ;;  %s3991_s1 = inlined_call_operand.vmem [shape: bf16[9,28], index: 1, kind: input, shape index: {}]   ;;  %s3992_s0 = inlined_call_operand.vmem [shape: bf16[1568,9], index: 0, kind: input, shape index: {}]   ;;  %s3993_s2 = inlined_call_operand.vmem [shape: f32[1,28], index: 2, kind: input, shape index: {}]   ;;  %s3994_s3 = inlined_call_operand.vmem [shape: bf16[392,28], index: 3, kind: output, shape index: {}]  }
   0x1   :  { %v2926_v0 = vld [vmem:[%s3991_s1] sm:$0x1f]   ;;  %v1005_v2 = vsel %vm1003_vm0, 4294967295, %v3025_v1  ;;  %v2928_v5 = vld [vmem:[%s3992_s0 + $0x190] sm:$0xff]   ;;  %v2929_v7 = vld [vmem:[%s3992_s0 + $0x8] sm:$0xff]   ;;  %vm2276_vm3 = vcmask 224256  }
   0x2   :  { %v2927_v3 = vld [vmem:[%s3992_s0] sm:$0xff]   ;;  %v1006_v4 = vsel %vm1004_vm1, %v1005_v2, 0  ;;  %2827 = vmatprep.mubr.msk.bf16.mxu1 %vm708_vm2, %v2928_v5  ;;  %v2930_v8 = vld [vmem:[%s3992_s0 + $0x198] sm:$0xff]   ;;  %v2931_v9 = vld [vmem:[%s3992_s0 + $0x10] sm:$0xff]  }
   0x3   :  { %v1008_v6 = vand.u32 %v2926_v0, %v1006_v4  ;;  %2727 = vmatprep.mubr.msk.bf16.mxu0 %vm708_vm2, %v2927_v3  ;;  %v2932_v10 = vld [vmem:[%s3992_s0 + $0x1a0] sm:$0xff]   ;;  %v2933_v11 = vld [vmem:[%s3992_s0 + $0x18] sm:$0xff]   ;;  %v2934_v12 = vld [vmem:[%s3992_s0 + $0x1a8] sm:$0xff]  }
   0x4   :  { %v2935_v13 = vld [vmem:[%s3992_s0 + $0x20] sm:$0xff]   ;;  %v2936_v14 = vld [vmem:[%s3992_s0 + $0x1b0] sm:$0xff]   ;;  %v2937_v15 = vld [vmem:[%s3992_s0 + $0x28] sm:$0xff]  }
   0x5   :  { %2725 = vmatprep.subr.bf16.mxu0 %v1008_v6  ;;  %2923 = vmatprep.subr.bf16.mxu1 %v1008_v6  ;;  %v2938_v16 = vld [vmem:[%s3992_s0 + $0x1b8] sm:$0xff]   ;;  %v2939_v17 = vld [vmem:[%s3992_s0 + $0x30] sm:$0xff]   ;;  %v2940_v18 = vld [vmem:[%s3992_s0 + $0x1c0] sm:$0xff]  }
   0x6   :  { %2726 = vmatpush3.bf16.msra.mxu0 %v1008_v6  ;;  %2924 = vmatpush3.bf16.msra.mxu1 %v1008_v6  ;;  %v2941_v19 = vld [vmem:[%s3992_s0 + $0x38] sm:$0xff]   ;;  %v2942_v20 = vld [vmem:[%s3992_s0 + $0x1c8] sm:$0xff]   ;;  %v2943_v21 = vld [vmem:[%s3992_s0 + $0x40] sm:$0xff]  }
   0x7   :  { %v2944_v22 = vld [vmem:[%s3992_s0 + $0x1d0] sm:$0xff]   ;;  %v2945_v23 = vld [vmem:[%s3992_s0 + $0x48] sm:$0xff]   ;;  %v2946_v24 = vld [vmem:[%s3992_s0 + $0x1d8] sm:$0xff]  }
   0x8   :  { %v2947_v25 = vld [vmem:[%s3992_s0 + $0x50] sm:$0xff]   ;;  %v2948_v26 = vld [vmem:[%s3992_s0 + $0x1e0] sm:$0xff]   ;;  %v2949_v27 = vld [vmem:[%s3992_s0 + $0x58] sm:$0xff]  }
   0x9   :  { %2728 = vmatmul.mubr.msk.bf16.vlgmr.msra.gmra.mxu0 %vm708_vm2, %v2929_v7  ;;  %2828 = vmatmul.mubr.msk.bf16.vlgmr.msra.gmra.mxu1 %vm708_vm2, %v2930_v8  ;;  %v2950_v28 = vld [vmem:[%s3992_s0 + $0x1e8] sm:$0xff]   ;;  %v2951_v29 = vld [vmem:[%s3992_s0 + $0x60] sm:$0xff]   ;;  %v2952_v30 = vld [vmem:[%s3992_s0 + $0x1f0] sm:$0xff]  }
   0xa   :  { %2731 = vmatprep.mubr.msk.bf16.mxu0 %vm708_vm2, %v2931_v9  ;;  %2831 = vmatprep.mubr.msk.bf16.mxu1 %vm708_vm2, %v2932_v10  ;;  %v2953_v31 = vld [vmem:[%s3992_s0 + $0x68] sm:$0xff]   ;;  %v2954_v32 = vld [vmem:[%s3992_s0 + $0x1f8] sm:$0xff]   ;;  %v2955_v33 = vld [vmem:[%s3992_s0 + $0x70] sm:$0xff]  }
   0xb   :  { %v2956_v34 = vld [vmem:[%s3992_s0 + $0x200] sm:$0xff]   ;;  %v2957_v35 = vld [vmem:[%s3992_s0 + $0x78] sm:$0xff]   ;;  %v2958_v36 = vld [vmem:[%s3992_s0 + $0x208] sm:$0xff]  }
   0xc   :  { %v2959_v37 = vld [vmem:[%s3992_s0 + $0x80] sm:$0xff]   ;;  %v2960_v38 = vld [vmem:[%s3992_s0 + $0x210] sm:$0xff]   ;;  %v2961_v39 = vld [vmem:[%s3992_s0 + $0x88] sm:$0xff]  }
   0xd   :  { %v2962_v40 = vld [vmem:[%s3992_s0 + $0x218] sm:$0xff]   ;;  %v2963_v41 = vld [vmem:[%s3992_s0 + $0x90] sm:$0xff]   ;;  %v2964_v42 = vld [vmem:[%s3992_s0 + $0x220] sm:$0xff]  }
   0xe   :  { %v2965_v43 = vld [vmem:[%s3992_s0 + $0x98] sm:$0xff]   ;;  %v2966_v44 = vld [vmem:[%s3992_s0 + $0x228] sm:$0xff]   ;;  %v2967_v45 = vld [vmem:[%s3992_s0 + $0xa0] sm:$0xff]  }
   0xf   :  { %v2968_v46 = vld [vmem:[%s3992_s0 + $0x230] sm:$0xff]   ;;  %v2969_v47 = vld [vmem:[%s3992_s0 + $0xa8] sm:$0xff]   ;;  %v2970_v48 = vld [vmem:[%s3992_s0 + $0x238] sm:$0xff]  }
  0x10   :  { %v2971_v49 = vld [vmem:[%s3992_s0 + $0xb0] sm:$0xff]   ;;  %v2972_v50 = vld [vmem:[%s3992_s0 + $0x240] sm:$0xff]   ;;  %v2973_v51 = vld [vmem:[%s3992_s0 + $0xb8] sm:$0xff]  }
  0x11   :  { %2732 = vmatmul.mubr.msk.bf16.gmra.mxu0 %vm708_vm2, %v2933_v11  ;;  %2832 = vmatmul.mubr.msk.bf16.gmra.mxu1 %vm708_vm2, %v2934_v12  ;;  %v2974_v52 = vld [vmem:[%s3992_s0 + $0x248] sm:$0xff]   ;;  %v2975_v53 = vld [vmem:[%s3992_s0 + $0xc0] sm:$0xff]   ;;  %v2976_v54 = vld [vmem:[%s3992_s0 + $0x250] sm:$0xff]  }
  0x12   :  { %2735 = vmatprep.mubr.msk.bf16.mxu0 %vm708_vm2, %v2935_v13  ;;  %2835 = vmatprep.mubr.msk.bf16.mxu1 %vm708_vm2, %v2936_v14  ;;  %v2977_v55 = vld [vmem:[%s3992_s0 + $0xc8] sm:$0xff]   ;;  %v2978_v56 = vld [vmem:[%s3992_s0 + $0x258] sm:$0xff]   ;;  %v2979_v57 = vld [vmem:[%s3992_s0 + $0xd0] sm:$0xff]  }
  0x13   :  { %v2980_v58 = vld [vmem:[%s3992_s0 + $0x260] sm:$0xff]   ;;  %v2981_v59 = vld [vmem:[%s3992_s0 + $0xd8] sm:$0xff]   ;;  %v2982_v60 = vld [vmem:[%s3992_s0 + $0x268] sm:$0xff]  }
  0x14   :  { %v2983_v61 = vld [vmem:[%s3992_s0 + $0xe0] sm:$0xff]   ;;  %v2984_v62 = vld [vmem:[%s3992_s0 + $0x270] sm:$0xff]   ;;  %v2985_v63 = vld [vmem:[%s3992_s0 + $0xe8] sm:$0xff]  }
  0x15   :  { %v2986_v0 = vld [vmem:[%s3992_s0 + $0x278] sm:$0xff]   ;;  %v2987_v1 = vld [vmem:[%s3992_s0 + $0xf0] sm:$0xff]   ;;  %v2988_v2 = vld [vmem:[%s3992_s0 + $0x280] sm:$0xff]  }
  0x16   :  { %v2989_v3 = vld [vmem:[%s3992_s0 + $0xf8] sm:$0xff]   ;;  %v2990_v4 = vld [vmem:[%s3992_s0 + $0x288] sm:$0xff]   ;;  %v2991_v5 = vld [vmem:[%s3992_s0 + $0x100] sm:$0xff]  }
  0x17   :  { %v2992_v6 = vld [vmem:[%s3992_s0 + $0x290] sm:$0xff]   ;;  %v2993_v7 = vld [vmem:[%s3992_s0 + $0x108] sm:$0xff]   ;;  %v2994_v8 = vld [vmem:[%s3992_s0 + $0x298] sm:$0xff]  }
  0x18   :  { %v2995_v9 = vld [vmem:[%s3992_s0 + $0x110] sm:$0xff]   ;;  %v2996_v10 = vld [vmem:[%s3992_s0 + $0x2a0] sm:$0xff]   ;;  %v2997_v11 = vld [vmem:[%s3992_s0 + $0x118] sm:$0xff]  }
  0x19   :  { %2736 = vmatmul.mubr.msk.bf16.gmra.mxu0 %vm708_vm2, %v2937_v15  ;;  %2836 = vmatmul.mubr.msk.bf16.gmra.mxu1 %vm708_vm2, %v2938_v16  ;;  %v2998_v12 = vld [vmem:[%s3992_s0 + $0x2a8] sm:$0xff]   ;;  %v2999_v13 = vld [vmem:[%s3992_s0 + $0x120] sm:$0xff]   ;;  %v3000_v14 = vld [vmem:[%s3992_s0 + $0x2b0] sm:$0xff]  }
  0x1a   :  { %2739 = vmatprep.mubr.msk.bf16.mxu0 %vm708_vm2, %v2939_v17  ;;  %2839 = vmatprep.mubr.msk.bf16.mxu1 %vm708_vm2, %v2940_v18  ;;  %v3001_v15 = vld [vmem:[%s3992_s0 + $0x128] sm:$0xff]   ;;  %v3002_v16 = vld [vmem:[%s3992_s0 + $0x2b8] sm:$0xff]   ;;  %v3003_v17 = vld [vmem:[%s3992_s0 + $0x130] sm:$0xff]  }
  0x1b   :  { %v3004_v18 = vld [vmem:[%s3992_s0 + $0x2c0] sm:$0xff]  }
  0x21   :  { %2740 = vmatmul.mubr.msk.bf16.gmra.mxu0 %vm708_vm2, %v2941_v19  ;;  %2840 = vmatmul.mubr.msk.bf16.gmra.mxu1 %vm708_vm2, %v2942_v20  ;;  %v3005_v19 = vld [vmem:[%s3992_s0 + $0x138] sm:$0xff]   ;;  %v3006_v20 = vld [vmem:[%s3992_s0 + $0x2c8] sm:$0xff]  }
  0x22   :  { %2743 = vmatprep.mubr.msk.bf16.mxu0 %vm708_vm2, %v2943_v21  ;;  %2843 = vmatprep.mubr.msk.bf16.mxu1 %vm708_vm2, %v2944_v22  ;;  %v3007_v21 = vld [vmem:[%s3992_s0 + $0x140] sm:$0xff]   ;;  %v3008_v22 = vld [vmem:[%s3992_s0 + $0x2d0] sm:$0xff]  }
  0x29   :  { %2744 = vmatmul.mubr.msk.bf16.gmra.mxu0 %vm708_vm2, %v2945_v23  ;;  %2844 = vmatmul.mubr.msk.bf16.gmra.mxu1 %vm708_vm2, %v2946_v24  ;;  %v3009_v23 = vld [vmem:[%s3992_s0 + $0x148] sm:$0xff]   ;;  %v3010_v24 = vld [vmem:[%s3992_s0 + $0x2d8] sm:$0xff]  }
  0x2a   :  { %2747 = vmatprep.mubr.msk.bf16.mxu0 %vm708_vm2, %v2947_v25  ;;  %2847 = vmatprep.mubr.msk.bf16.mxu1 %vm708_vm2, %v2948_v26  ;;  %v3011_v25 = vld [vmem:[%s3992_s0 + $0x150] sm:$0xff]   ;;  %v3012_v26 = vld [vmem:[%s3992_s0 + $0x2e0] sm:$0xff]  }
  0x31   :  { %2748 = vmatmul.mubr.msk.bf16.gmra.mxu0 %vm708_vm2, %v2949_v27  ;;  %2848 = vmatmul.mubr.msk.bf16.gmra.mxu1 %vm708_vm2, %v2950_v28  ;;  %v3013_v27 = vld [vmem:[%s3992_s0 + $0x158] sm:$0xff]   ;;  %v3014_v28 = vld [vmem:[%s3992_s0 + $0x2e8] sm:$0xff]  }
  0x32   :  { %2751 = vmatprep.mubr.msk.bf16.mxu0 %vm708_vm2, %v2951_v29  ;;  %2851 = vmatprep.mubr.msk.bf16.mxu1 %vm708_vm2, %v2952_v30  ;;  %v3015_v29 = vld [vmem:[%s3992_s0 + $0x160] sm:$0xff]   ;;  %v3016_v30 = vld [vmem:[%s3992_s0 + $0x2f0] sm:$0xff]  }
  0x39   :  { %2752 = vmatmul.mubr.msk.bf16.gmra.mxu0 %vm708_vm2, %v2953_v31  ;;  %2852 = vmatmul.mubr.msk.bf16.gmra.mxu1 %vm708_vm2, %v2954_v32  ;;  %v3017_v31 = vld [vmem:[%s3992_s0 + $0x168] sm:$0xff]   ;;  %v3018_v32 = vld [vmem:[%s3992_s0 + $0x2f8] sm:$0xff]  }
  0x3a   :  { %2755 = vmatprep.mubr.msk.bf16.mxu0 %vm708_vm2, %v2955_v33  ;;  %2855 = vmatprep.mubr.msk.bf16.mxu1 %vm708_vm2, %v2956_v34  ;;  %v3019_v33 = vld [vmem:[%s3992_s0 + $0x170] sm:$0xff]   ;;  %v3020_v34 = vld [vmem:[%s3992_s0 + $0x300] sm:$0xff]  }
  0x41   :  { %2756 = vmatmul.mubr.msk.bf16.gmra.mxu0 %vm708_vm2, %v2957_v35  ;;  %2856 = vmatmul.mubr.msk.bf16.gmra.mxu1 %vm708_vm2, %v2958_v36  ;;  %v3021_v35 = vld [vmem:[%s3992_s0 + $0x178] sm:$0xff]   ;;  %v3022_v36 = vld [vmem:[%s3992_s0 + $0x308] sm:$0xff]  }
  0x42   :  { %2759 = vmatprep.mubr.msk.bf16.mxu0 %vm708_vm2, %v2959_v37  ;;  %2859 = vmatprep.mubr.msk.bf16.mxu1 %vm708_vm2, %v2960_v38  ;;  %v3023_v37 = vld [vmem:[%s3992_s0 + $0x180] sm:$0xff]   ;;  %v3024_v38 = vld [vmem:[%s3992_s0 + $0x188] sm:$0xff]  }
  0x49   :  { %2760 = vmatmul.mubr.msk.bf16.gmra.mxu0 %vm708_vm2, %v2961_v39  ;;  %2860 = vmatmul.mubr.msk.bf16.gmra.mxu1 %vm708_vm2, %v2962_v40 }
  0x4a   :  { %2763 = vmatprep.mubr.msk.bf16.mxu0 %vm708_vm2, %v2963_v41  ;;  %2863 = vmatprep.mubr.msk.bf16.mxu1 %vm708_vm2, %v2964_v42 }
  0x51   :  { %2764 = vmatmul.mubr.msk.bf16.gmra.mxu0 %vm708_vm2, %v2965_v43  ;;  %2864 = vmatmul.mubr.msk.bf16.gmra.mxu1 %vm708_vm2, %v2966_v44 }
  0x52   :  { %2767 = vmatprep.mubr.msk.bf16.mxu0 %vm708_vm2, %v2967_v45  ;;  %2867 = vmatprep.mubr.msk.bf16.mxu1 %vm708_vm2, %v2968_v46 }
  0x59   :  { %2768 = vmatmul.mubr.msk.bf16.gmra.mxu0 %vm708_vm2, %v2969_v47  ;;  %2868 = vmatmul.mubr.msk.bf16.gmra.mxu1 %vm708_vm2, %v2970_v48 }
  0x5a   :  { %2771 = vmatprep.mubr.msk.bf16.mxu0 %vm708_vm2, %v2971_v49  ;;  %2871 = vmatprep.mubr.msk.bf16.mxu1 %vm708_vm2, %v2972_v50 }
  0x61   :  { %2772 = vmatmul.mubr.msk.bf16.gmra.mxu0 %vm708_vm2, %v2973_v51  ;;  %2872 = vmatmul.mubr.msk.bf16.gmra.mxu1 %vm708_vm2, %v2974_v52 }
  0x62   :  { %2775 = vmatprep.mubr.msk.bf16.mxu0 %vm708_vm2, %v2975_v53  ;;  %2875 = vmatprep.mubr.msk.bf16.mxu1 %vm708_vm2, %v2976_v54 }
  0x69   :  { %2776 = vmatmul.mubr.msk.bf16.gmra.mxu0 %vm708_vm2, %v2977_v55  ;;  %2876 = vmatmul.mubr.msk.bf16.gmra.mxu1 %vm708_vm2, %v2978_v56 }
  0x6a   :  { %2779 = vmatprep.mubr.msk.bf16.mxu0 %vm708_vm2, %v2979_v57  ;;  %2879 = vmatprep.mubr.msk.bf16.mxu1 %vm708_vm2, %v2980_v58 }
  0x71   :  { %2780 = vmatmul.mubr.msk.bf16.gmra.mxu0 %vm708_vm2, %v2981_v59  ;;  %2880 = vmatmul.mubr.msk.bf16.gmra.mxu1 %vm708_vm2, %v2982_v60 }
  0x72   :  { %2783 = vmatprep.mubr.msk.bf16.mxu0 %vm708_vm2, %v2983_v61  ;;  %2883 = vmatprep.mubr.msk.bf16.mxu1 %vm708_vm2, %v2984_v62 }
  0x79   :  { %2784 = vmatmul.mubr.msk.bf16.gmra.mxu0 %vm708_vm2, %v2985_v63  ;;  %2884 = vmatmul.mubr.msk.bf16.gmra.mxu1 %vm708_vm2, %v2986_v0 }
  0x7a   :  { %2787 = vmatprep.mubr.msk.bf16.mxu0 %vm708_vm2, %v2987_v1  ;;  %2887 = vmatprep.mubr.msk.bf16.mxu1 %vm708_vm2, %v2988_v2 }
  0x81   :  { %2788 = vmatmul.mubr.msk.bf16.gmra.mxu0 %vm708_vm2, %v2989_v3  ;;  %2888 = vmatmul.mubr.msk.bf16.gmra.mxu1 %vm708_vm2, %v2990_v4 }
  0x82   :  { %2791 = vmatprep.mubr.msk.bf16.mxu0 %vm708_vm2, %v2991_v5  ;;  %2891 = vmatprep.mubr.msk.bf16.mxu1 %vm708_vm2, %v2992_v6 }
  0x89   :  { %2792 = vmatmul.mubr.msk.bf16.gmra.mxu0 %vm708_vm2, %v2993_v7  ;;  %2892 = vmatmul.mubr.msk.bf16.gmra.mxu1 %vm708_vm2, %v2994_v8 }
  0x8a   :  { %2795 = vmatprep.mubr.msk.bf16.mxu0 %vm708_vm2, %v2995_v9  ;;  %2895 = vmatprep.mubr.msk.bf16.mxu1 %vm708_vm2, %v2996_v10 }
  0x91   :  { %2796 = vmatmul.mubr.msk.bf16.gmra.mxu0 %vm708_vm2, %v2997_v11  ;;  %2896 = vmatmul.mubr.msk.bf16.gmra.mxu1 %vm708_vm2, %v2998_v12 }
  0x92   :  { %2799 = vmatprep.mubr.msk.bf16.mxu0 %vm708_vm2, %v2999_v13  ;;  %2899 = vmatprep.mubr.msk.bf16.mxu1 %vm708_vm2, %v3000_v14 }
  0x99   :  { %2800 = vmatmul.mubr.msk.bf16.gmra.mxu0 %vm708_vm2, %v3001_v15  ;;  %2900 = vmatmul.mubr.msk.bf16.gmra.mxu1 %vm708_vm2, %v3002_v16 }
  0x9a   :  { %2803 = vmatprep.mubr.msk.bf16.mxu0 %vm708_vm2, %v3003_v17  ;;  %2903 = vmatprep.mubr.msk.bf16.mxu1 %vm708_vm2, %v3004_v18 }
  0xa1   :  { %2804 = vmatmul.mubr.msk.bf16.gmra.mxu0 %vm708_vm2, %v3005_v19  ;;  %2904 = vmatmul.mubr.msk.bf16.gmra.mxu1 %vm708_vm2, %v3006_v20 }
  0xa2   :  { %2807 = vmatprep.mubr.msk.bf16.mxu0 %vm708_vm2, %v3007_v21  ;;  %2907 = vmatprep.mubr.msk.bf16.mxu1 %vm708_vm2, %v3008_v22 }
  0xa9   :  { %2808 = vmatmul.mubr.msk.bf16.gmra.mxu0 %vm708_vm2, %v3009_v23  ;;  %2908 = vmatmul.mubr.msk.bf16.gmra.mxu1 %vm708_vm2, %v3010_v24 }
  0xaa   :  { %2811 = vmatprep.mubr.msk.bf16.mxu0 %vm708_vm2, %v3011_v25  ;;  %2911 = vmatprep.mubr.msk.bf16.mxu1 %vm708_vm2, %v3012_v26 }
  0xb1   :  { %2812 = vmatmul.mubr.msk.bf16.gmra.mxu0 %vm708_vm2, %v3013_v27  ;;  %2912 = vmatmul.mubr.msk.bf16.gmra.mxu1 %vm708_vm2, %v3014_v28 }
  0xb2   :  { %2815 = vmatprep.mubr.msk.bf16.mxu0 %vm708_vm2, %v3015_v29  ;;  %2915 = vmatprep.mubr.msk.bf16.mxu1 %vm708_vm2, %v3016_v30 }
  0xb9   :  { %2816 = vmatmul.mubr.msk.bf16.gmra.mxu0 %vm708_vm2, %v3017_v31  ;;  %2916 = vmatmul.mubr.msk.bf16.gmra.mxu1 %vm708_vm2, %v3018_v32 }
  0xba   :  { %2819 = vmatprep.mubr.msk.bf16.mxu0 %vm708_vm2, %v3019_v33  ;;  %2919 = vmatprep.mubr.msk.bf16.mxu1 %vm708_vm2, %v3020_v34 }
  0xc1   :  { %2820 = vmatmul.mubr.msk.bf16.gmra.mxu0 %vm708_vm2, %v3021_v35  ;;  %2920 = vmatmul.mubr.msk.bf16.gmra.mxu1 %vm708_vm2, %v3022_v36 }
  0xc2   :  { %2823 = vmatprep.mubr.msk.bf16.mxu0 %vm708_vm2, %v3023_v37 }
  0xc9   :  { %v3440_v39 = vpop.f32.mrf.mxu0  ;;  %2824 = vmatmul.mubr.msk.bf16.gmra.mxu0 %vm708_vm2, %v3024_v38  ;;  %v3443_v40 = vpop.f32.mrf.mxu1 }
  0xcb   :  { %v3445_v41 = vpop.f32.mrf.mxu0  ;;  %v3447_v42 = vpop.f32.mrf.mxu1 }
  0xcc   :  { %3995 = vst [vmem:[#allocation2_spill] sm:$0xff] %v3445_v41 }
  0xcd   :  { %v3449_v43 = vpop.f32.mrf.mxu0  ;;  %v3451_v44 = vpop.f32.mrf.mxu1 }
  0xcf   :  { %v3453_v45 = vpop.f32.mrf.mxu0  ;;  %v3455_v46 = vpop.f32.mrf.mxu1 }
  0xd0   :  { %3996 = vst [vmem:[#allocation3_spill] sm:$0xff] %v3453_v45 }
  0xd1   :  { %v3457_v47 = vpop.f32.mrf.mxu0  ;;  %v3459_v48 = vpop.f32.mrf.mxu1 }
  0xd3   :  { %v3461_v49 = vpop.f32.mrf.mxu0  ;;  %v3463_v50 = vpop.f32.mrf.mxu1 }
  0xd5   :  { %v3465_v51 = vpop.f32.mrf.mxu0  ;;  %v3467_v52 = vpop.f32.mrf.mxu1 }
  0xd7   :  { %v3469_v53 = vpop.f32.mrf.mxu0  ;;  %v3471_v54 = vpop.f32.mrf.mxu1 }
  0xd9   :  { %v3473_v55 = vpop.f32.mrf.mxu0  ;;  %v3475_v56 = vpop.f32.mrf.mxu1 }
  0xdb   :  { %v3477_v57 = vpop.f32.mrf.mxu0  ;;  %v3479_v58 = vpop.f32.mrf.mxu1 }
  0xdd   :  { %v3481_v59 = vpop.f32.mrf.mxu0  ;;  %v3483_v60 = vpop.f32.mrf.mxu1 }
  0xdf   :  { %v3485_v61 = vpop.f32.mrf.mxu0  ;;  %v3487_v62 = vpop.f32.mrf.mxu1 }
  0xe1   :  { %v3489_v63 = vpop.f32.mrf.mxu0  ;;  %v3491_v0 = vpop.f32.mrf.mxu1 }
  0xe3   :  { %v3493_v1 = vpop.f32.mrf.mxu0  ;;  %v3495_v2 = vpop.f32.mrf.mxu1 }
  0xe5   :  { %v3497_v3 = vpop.f32.mrf.mxu0  ;;  %v3499_v4 = vpop.f32.mrf.mxu1 }
  0xe7   :  { %v3501_v5 = vpop.f32.mrf.mxu0  ;;  %v3503_v6 = vpop.f32.mrf.mxu1 }
  0xe9   :  { %v3505_v7 = vpop.f32.mrf.mxu0  ;;  %v3507_v8 = vpop.f32.mrf.mxu1 }
  0xeb   :  { %v3509_v9 = vpop.f32.mrf.mxu0  ;;  %v3511_v10 = vpop.f32.mrf.mxu1 }
  0xed   :  { %v3513_v11 = vpop.f32.mrf.mxu0  ;;  %v3515_v12 = vpop.f32.mrf.mxu1 }
  0xef   :  { %v3517_v13 = vpop.f32.mrf.mxu0  ;;  %v3519_v14 = vpop.f32.mrf.mxu1 }
  0xf1   :  { %v3521_v15 = vpop.f32.mrf.mxu0  ;;  %v3523_v16 = vpop.f32.mrf.mxu1 }
  0xf2   :  { %3997 = vst [vmem:[#allocation4_spill] sm:$0xff] %v3523_v16 }
  0xf3   :  { %v3525_v17 = vpop.f32.mrf.mxu0  ;;  %v3527_v18 = vpop.f32.mrf.mxu1 }
  0xf5   :  { %v3529_v19 = vpop.f32.mrf.mxu0  ;;  %v3531_v20 = vpop.f32.mrf.mxu1 }
  0xf6   :  { %3998 = vst [vmem:[#allocation5_spill] sm:$0xff] %v3531_v20 }
  0xf7   :  { %v3533_v21 = vpop.f32.mrf.mxu0  ;;  %v3535_v22 = vpop.f32.mrf.mxu1 }
  0xf9   :  { %v3537_v23 = vpop.f32.mrf.mxu0  ;;  %v3539_v24 = vpop.f32.mrf.mxu1 }
  0xfa   :  { %3999 = vst [vmem:[#allocation6_spill] sm:$0xff] %v3537_v23  ;;  %4000 = vst [vmem:[#allocation7_spill] sm:$0xff] %v3539_v24 }
  0xfb   :  { %v3541_v25 = vpop.f32.mrf.mxu0  ;;  %v3543_v26 = vpop.f32.mrf.mxu1 }
  0xfc   :  { %4001 = vst [vmem:[#allocation8_spill] sm:$0xff] %v3541_v25  ;;  %4002 = vst [vmem:[#allocation9_spill] sm:$0xff] %v3543_v26 }
  0xfd   :  { %v3545_v27 = vpop.f32.mrf.mxu0  ;;  %v3547_v28 = vpop.f32.mrf.mxu1 }
  0xfe   :  { %4003 = vst [vmem:[#allocation10_spill] sm:$0xff] %v3545_v27  ;;  %4004 = vst [vmem:[#allocation11_spill] sm:$0xff] %v3547_v28 }
  0xff   :  { %v3549_v29 = vpop.f32.mrf.mxu0  ;;  %v3551_v30 = vpop.f32.mrf.mxu1 }
 0x100   :  { %4005 = vst [vmem:[#allocation12_spill] sm:$0xff] %v3551_v30 }
 0x101   :  { %v3553_v31 = vpop.f32.mrf.mxu0  ;;  %v3555_v32 = vpop.f32.mrf.mxu1 }
 0x102   :  { %4006 = vst [vmem:[#allocation13_spill] sm:$0xff] %v3553_v31  ;;  %4007 = vst [vmem:[#allocation14_spill] sm:$0xff] %v3555_v32 }
 0x103   :  { %v3557_v33 = vpop.f32.mrf.mxu0  ;;  %v3559_v34 = vpop.f32.mrf.mxu1 }
 0x104   :  { %4008 = vst [vmem:[#allocation15_spill] sm:$0xff] %v3557_v33  ;;  %4009 = vst [vmem:[#allocation16_spill] sm:$0xff] %v3559_v34 }
 0x105   :  { %v3561_v35 = vpop.f32.mrf.mxu0  ;;  %v3563_v36 = vpop.f32.mrf.mxu1 }
 0x106   :  { %4010 = vst [vmem:[#allocation17_spill] sm:$0xff] %v3561_v35  ;;  %4011 = vst [vmem:[#allocation18_spill] sm:$0xff] %v3563_v36 }
 0x107   :  { %v3565_v37 = vpop.f32.mrf.mxu0  ;;  %v3567_v38 = vpop.f32.mrf.mxu1 }
 0x108   :  { %4012 = vst [vmem:[#allocation19_spill] sm:$0xff] %v3565_v37  ;;  %4013 = vst [vmem:[#allocation20_spill] sm:$0xff] %v3567_v38 }
 0x109   :  { %v3569_v45 = vpop.f32.mrf.mxu0  ;;  %v3571_v41 = vpop.f32.mrf.mxu1 }
 0x10a   :  { %4014 = vst [vmem:[#allocation21_spill] sm:$0xff] %v3569_v45  ;;  %4015 = vst [vmem:[#allocation22_spill] sm:$0xff] %v3571_v41 }
 0x10b   :  { %v3573_v24 = vpop.f32.mrf.mxu0  ;;  %v3575_v31 = vpop.f32.mrf.mxu1 }
 0x10c   :  { %4016 = vst [vmem:[#allocation23_spill] sm:$0xff] %v3573_v24  ;;  %4017 = vst [vmem:[#allocation24_spill] sm:$0xff] %v3575_v31 }
 0x10d   :  { %v3577_v32 = vpop.f32.mrf.mxu0  ;;  %v3579_v33 = vpop.f32.mrf.mxu1 }
 0x10e   :  { %4018 = vst [vmem:[#allocation25_spill] sm:$0xff] %v3577_v32  ;;  %4019 = vst [vmem:[#allocation26_spill] sm:$0xff] %v3579_v33 }
 0x10f   :  { %v3581_v34 = vpop.f32.mrf.mxu0  ;;  %v3583_v35 = vpop.f32.mrf.mxu1 }
 0x110   :  { %4020 = vst [vmem:[#allocation27_spill] sm:$0xff] %v3581_v34  ;;  %4021 = vst [vmem:[#allocation28_spill] sm:$0xff] %v3583_v35 }
 0x111   :  { %v3585_v36 = vpop.f32.mrf.mxu0  ;;  %v3587_v28 = vpop.f32.mrf.mxu1 }
 0x112   :  { %4022 = vst [vmem:[#allocation29_spill] sm:$0xff] %v3585_v36  ;;  %4023 = vst [vmem:[#allocation30_spill] sm:$0xff] %v3587_v28 }
 0x113   :  { %v3589_v38 = vpop.f32.mrf.mxu0  ;;  %v3591_v45 = vpop.f32.mrf.mxu1 }
 0x114   :  { %4024 = vst [vmem:[#allocation31_spill] sm:$0xff] %v3589_v38  ;;  %4025 = vst [vmem:[#allocation32_spill] sm:$0xff] %v3591_v45 }
 0x115   :  { %v3593_v41 = vpop.f32.mrf.mxu0  ;;  %v3595_v24 = vpop.f32.mrf.mxu1 }
 0x116   :  { %4026 = vst [vmem:[#allocation33_spill] sm:$0xff] %v3593_v41  ;;  %4027 = vst [vmem:[#allocation34_spill] sm:$0xff] %v3595_v24 }
 0x117   :  { %v3597_v31 = vpop.f32.mrf.mxu0  ;;  %v3599_v32 = vpop.f32.mrf.mxu1 }
 0x118   :  { %4028 = vst [vmem:[#allocation35_spill] sm:$0xff] %v3597_v31  ;;  %4029 = vst [vmem:[#allocation36_spill] sm:$0xff] %v3599_v32 }
 0x119   :  { %v3601_v33 = vpop.f32.mrf.mxu0  ;;  %v3603_v34 = vpop.f32.mrf.mxu1 }
 0x11a   :  { %4030 = vst [vmem:[#allocation37_spill] sm:$0xff] %v3601_v33  ;;  %4031 = vst [vmem:[#allocation38_spill] sm:$0xff] %v3603_v34 }
 0x11b   :  { %v3605_v35 = vpop.f32.mrf.mxu0  ;;  %v3607_v36 = vpop.f32.mrf.mxu1 }
 0x11c   :  { %4032 = vst [vmem:[#allocation39_spill] sm:$0xff] %v3605_v35  ;;  %4033 = vst [vmem:[#allocation40_spill] sm:$0xff] %v3607_v36 }
 0x11d   :  { %v3609_v28 = vpop.f32.mrf.mxu0  ;;  %v3611_v38 = vpop.f32.mrf.mxu1 }
 0x11e   :  { %4034 = vst [vmem:[#allocation41_spill] sm:$0xff] %v3609_v28  ;;  %4035 = vst [vmem:[#allocation42_spill] sm:$0xff] %v3611_v38 }
 0x11f   :  { %v3613_v45 = vpop.f32.mrf.mxu0  ;;  %v3615_v41 = vpop.f32.mrf.mxu1 }
 0x120   :  { %4036 = vst [vmem:[#allocation43_spill] sm:$0xff] %v3613_v45  ;;  %4037 = vst [vmem:[#allocation44_spill] sm:$0xff] %v3615_v41 }
 0x121   :  { %v3617_v24 = vpop.f32.mrf.mxu0  ;;  %v3619_v31 = vpop.f32.mrf.mxu1 }
 0x122   :  { %4038 = vst [vmem:[#allocation45_spill] sm:$0xff] %v3617_v24  ;;  %4039 = vst [vmem:[#allocation46_spill] sm:$0xff] %v3619_v31 }
 0x123   :  { %v3621_v32 = vpop.f32.mrf.mxu0  ;;  %v3623_v33 = vpop.f32.mrf.mxu1 }
 0x124   :  { %4040 = vst [vmem:[#allocation47_spill] sm:$0xff] %v3621_v32  ;;  %4041 = vst [vmem:[#allocation48_spill] sm:$0xff] %v3623_v33 }
 0x125   :  { %v3625_v34 = vpop.f32.mrf.mxu0  ;;  %v3627_v35 = vpop.f32.mrf.mxu1 }
 0x126   :  { %4042 = vst [vmem:[#allocation49_spill] sm:$0xff] %v3625_v34  ;;  %4043 = vst [vmem:[#allocation50_spill] sm:$0xff] %v3627_v35 }
 0x127   :  { %v3629_v36 = vpop.f32.mrf.mxu0  ;;  %v3631_v28 = vpop.f32.mrf.mxu1 }
 0x128   :  { %4044 = vst [vmem:[#allocation51_spill] sm:$0xff] %v3629_v36  ;;  %4045 = vst [vmem:[#allocation52_spill] sm:$0xff] %v3631_v28  ;;  %v3646_v28 = vld [vmem:[%s3993_s2] ss:$0 sm:$0xff] }
 0x129   :  { %v3633_v38 = vpop.f32.mrf.mxu0  ;;  %v2877_v45 = vpop.f32.mrf.mxu1 }
 0x12a   :  { %4046 = vst [vmem:[#allocation53_spill] sm:$0xff] %v3633_v38 }
 0x12b   :  { %v3635_v41 = vpop.f32.mrf.mxu0  ;;  %v3637_v24 = vpop.f32.mrf.mxu1 }
 0x12c   :  { %4047 = vst [vmem:[#allocation54_spill] sm:$0xff] %v3635_v41  ;;  %4048 = vst [vmem:[#allocation55_spill] sm:$0xff] %v3637_v24  ;;  %v1879_v41 = vmax.f32 %v3455_v46, %v2877_v45 }
 0x12d   :  { %v2778_v31 = vpop.f32.mrf.mxu0  ;;  %v2878_v27 = vpop.f32.mrf.mxu1 }
 0x12e   :  { %v1829_v34 = vmax.f32 %v3440_v39, %v2778_v31  ;;  %v1880_v20 = vmax.f32 %v3443_v40, %v2878_v27 }
 0x12f   :  { %v3639_v32 = vpop.f32.mrf.mxu0  ;;  %v1639_v33 = vpop.f32.mrf.mxu1 }
 0x130   :  { %4049 = vst [vmem:[#allocation56_spill] sm:$0xff] %v3639_v32  ;;  %v1878_v35 = vmax.f32 %v3447_v42, %v1639_v33 }
 0x131   :  { %v2781_v38 = vpop.f32.mrf.mxu0  ;;  %v2881_v36 = vpop.f32.mrf.mxu1 }
 0x132   :  { %v1927_v37 = vmax.f32 %v1829_v34, %v1878_v35  ;;  %v1832_v32 = vmax.f32 %v3469_v53, %v2781_v38 }
 0x133   :  { %v1252_v24 = vpop.f32.mrf.mxu0  ;;  %v1652_v30 = vpop.f32.mrf.mxu1 }
 0x134   :  { %v1983_v26 = vadd.f32 %v3646_v28, %v1927_v37  ;;  %v1830_v39 = vmax.f32 %v3449_v43, %v1252_v24  ;;  %v1881_v42 = vmax.f32 %v3451_v44, %v1652_v30 }
 0x135   :  { %v2782_v31 = vpop.f32.mrf.mxu0  ;;  %v2882_v33 = vpop.f32.mrf.mxu1 }
 0x136   :  { %v2032_v23 = vmax.f32 %v1983_v26, 0.0  ;;  %v1928_v25 = vmax.f32 %v1830_v39, %v1879_v41  ;;  %v1930_v16 = vmax.f32 %v1832_v32, %v1881_v42  ;;  %v1833_v43 = vmax.f32 %v3457_v47, %v2782_v31 }
 0x137   :  { %v1255_v34 = vpop.f32.mrf.mxu0  ;;  %v1655_v45 = vpop.f32.mrf.mxu1 }
 0x138   :  { %v2579_v46 = vpack.c.bf16 %v2032_v23, %v2032_v23  ;;  %v1984_v35 = vadd.f32 %v3646_v28, %v1928_v25  ;;  %v1986_v37 = vadd.f32 %v3646_v28, %v1930_v16  ;;  %v1831_v53 = vmax.f32 %v3461_v49, %v1255_v34 }
 0x139   :  { %v1882_v44 = vmax.f32 %v3463_v50, %v1655_v45  ;;  %v2785_v24 = vpop.f32.mrf.mxu0  ;;  %v2885_v26 = vpop.f32.mrf.mxu1  ;;  %v1883_v25 = vmax.f32 %v3471_v54, %v2881_v36 }
 0x13a   :  { %2279 = vst.msk [vmem:[%s3994_s3 + $0x8] sm:$0xf] %vm2276_vm3, %v2579_v46  ;;  %v2033_v40 = vmax.f32 %v1984_v35, 0.0  ;;  %v2035_v41 = vmax.f32 %v1986_v37, 0.0  ;;  %v1929_v23 = vmax.f32 %v1831_v53, %v1880_v20  ;;  %v1836_v39 = vmax.f32 %v3485_v61, %v2785_v24 }
 0x13b   :  { %v1931_v27 = vmax.f32 %v1833_v43, %v1882_v44  ;;  %v1268_v16 = vpop.f32.mrf.mxu0  ;;  %v1668_v30 = vpop.f32.mrf.mxu1  ;;  %v1884_v20 = vmax.f32 %v3459_v48, %v2882_v33 }
 0x13c   :  { %v2580_v49 = vpack.c.bf16 %v2033_v40, %v2033_v40  ;;  %v2582_v32 = vpack.c.bf16 %v2035_v41, %v2035_v41  ;;  %v1985_v47 = vadd.f32 %v3646_v28, %v1929_v23  ;;  %v1834_v50 = vmax.f32 %v3465_v51, %v1268_v16 }
 0x13d   :  { %v1987_v38 = vadd.f32 %v3646_v28, %v1931_v27  ;;  %v1885_v42 = vmax.f32 %v3467_v52, %v1668_v30  ;;  %v2786_v31 = vpop.f32.mrf.mxu0  ;;  %v2886_v34 = vpop.f32.mrf.mxu1 }
 0x13e   :  { %2280 = vst.msk [vmem:[%s3994_s3 + $0xc] sm:$0xf] %vm2276_vm3, %v2580_v49  ;;  %2282 = vst.msk [vmem:[%s3994_s3 + $0x14] sm:$0xf] %vm2276_vm3, %v2582_v32  ;;  %v2034_v54 = vmax.f32 %v1985_v47, 0.0  ;;  %v1932_v51 = vmax.f32 %v1834_v50, %v1883_v25  ;;  %v1837_v52 = vmax.f32 %v3473_v55, %v2786_v31 }
 0x13f   :  { %v2036_v36 = vmax.f32 %v1987_v38, 0.0  ;;  %v1934_v61 = vmax.f32 %v1836_v39, %v1885_v42  ;;  %v1271_v45 = vpop.f32.mrf.mxu0  ;;  %v1671_v46 = vpop.f32.mrf.mxu1 }
 0x140   :  { %v2581_v35 = vpack.c.bf16 %v2034_v54, %v2034_v54  ;;  %v1988_v37 = vadd.f32 %v3646_v28, %v1932_v51  ;;  %v1835_v53 = vmax.f32 %v3477_v57, %v1271_v45  ;;  %v1886_v43 = vmax.f32 %v3479_v58, %v1671_v46 }
 0x141   :  { %v2583_v44 = vpack.c.bf16 %v2036_v36, %v2036_v36  ;;  %v1990_v24 = vadd.f32 %v3646_v28, %v1934_v61  ;;  %v2789_v40 = vpop.f32.mrf.mxu0  ;;  %v2889_v41 = vpop.f32.mrf.mxu1  ;;  %v1887_v57 = vmax.f32 %v3487_v62, %v2885_v26 }
 0x142   :  { %2281 = vst.msk [vmem:[%s3994_s3 + $0x10] sm:$0xf] %vm2276_vm3, %v2581_v35  ;;  %v2037_v48 = vmax.f32 %v1988_v37, 0.0  ;;  %v1933_v55 = vmax.f32 %v1835_v53, %v1884_v20  ;;  %v1935_v33 = vmax.f32 %v1837_v52, %v1886_v43  ;;  %v1840_v47 = vmax.f32 %v3501_v5, %v2789_v40 }
 0x143   :  { %2283 = vst.msk [vmem:[%s3994_s3 + $0x18] sm:$0xf] %vm2276_vm3, %v2583_v44  ;;  %v2039_v58 = vmax.f32 %v1990_v24, 0.0  ;;  %v1284_v23 = vpop.f32.mrf.mxu0  ;;  %v1684_v25 = vpop.f32.mrf.mxu1 }
 0x144   :  { %v2584_v27 = vpack.c.bf16 %v2037_v48, %v2037_v48  ;;  %v1989_v16 = vadd.f32 %v3646_v28, %v1933_v55  ;;  %v1991_v30 = vadd.f32 %v3646_v28, %v1935_v33  ;;  %v1838_v49 = vmax.f32 %v3481_v59, %v1284_v23 }
 0x145   :  { %v2586_v32 = vpack.c.bf16 %v2039_v58, %v2039_v58  ;;  %v1889_v50 = vmax.f32 %v3483_v60, %v1684_v25  ;;  %v2790_v38 = vpop.f32.mrf.mxu0  ;;  %v2890_v39 = vpop.f32.mrf.mxu1  ;;  %v1888_v59 = vmax.f32 %v3475_v56, %v2886_v34  ;;  %v1891_v34 = vmax.f32 %v3503_v6, %v2889_v41 }
 0x146   :  { %2284 = vst.msk [vmem:[%s3994_s3 + $0x1c] sm:$0xf] %vm2276_vm3, %v2584_v27  ;;  %v2038_v62 = vmax.f32 %v1989_v16, 0.0  ;;  %v2040_v26 = vmax.f32 %v1991_v30, 0.0  ;;  %v1936_v42 = vmax.f32 %v1838_v49, %v1887_v57  ;;  %v1841_v52 = vmax.f32 %v3489_v63, %v2790_v38 }
 0x147   :  { %2286 = vst.msk [vmem:[%s3994_s3 + $0x24] sm:$0xf] %vm2276_vm3, %v2586_v32  ;;  %v1938_v5 = vmax.f32 %v1840_v47, %v1889_v50  ;;  %v1287_v31 = vpop.f32.mrf.mxu0  ;;  %v1687_v60 = vpop.f32.mrf.mxu1 }
 0x148   :  { %v2585_v54 = vpack.c.bf16 %v2038_v62, %v2038_v62  ;;  %v2587_v51 = vpack.c.bf16 %v2040_v26, %v2040_v26  ;;  %v1992_v20 = vadd.f32 %v3646_v28, %v1936_v42  ;;  %v1839_v36 = vmax.f32 %v3493_v1, %v1287_v31 }
 0x149   :  { %v1994_v61 = vadd.f32 %v3646_v28, %v1938_v5  ;;  %v1890_v45 = vmax.f32 %v3495_v2, %v1687_v60  ;;  %v2793_v46 = vpop.f32.mrf.mxu0  ;;  %v2893_v35 = vpop.f32.mrf.mxu1 }
 0x14a   :  { %2285 = vst.msk [vmem:[%s3994_s3 + $0x20] sm:$0xf] %vm2276_vm3, %v2585_v54  ;;  %2287 = vst.msk [vmem:[%s3994_s3 + $0x28] sm:$0xf] %vm2276_vm3, %v2587_v51  ;;  %v2041_v56 = vmax.f32 %v1992_v20, 0.0  ;;  %v1937_v1 = vmax.f32 %v1839_v36, %v1888_v59  ;;  %v1844_v2 = vmax.f32 %v3517_v13, %v2793_v46 }
 0x14b   :  { %v2043_v37 = vmax.f32 %v1994_v61, 0.0  ;;  %v1939_v63 = vmax.f32 %v1841_v52, %v1890_v45  ;;  %v1300_v53 = vpop.f32.mrf.mxu0  ;;  %v1700_v43 = vpop.f32.mrf.mxu1 }
 0x14c   :  { %v2588_v44 = vpack.c.bf16 %v2041_v56, %v2041_v56  ;;  %v1993_v24 = vadd.f32 %v3646_v28, %v1937_v1  ;;  %v1842_v40 = vmax.f32 %v3497_v3, %v1300_v53  ;;  %v1893_v48 = vmax.f32 %v3499_v4, %v1700_v43 }
 0x14d   :  { %v2590_v55 = vpack.c.bf16 %v2043_v37, %v2043_v37  ;;  %v1995_v33 = vadd.f32 %v3646_v28, %v1939_v63  ;;  %v2794_v57 = vpop.f32.mrf.mxu0  ;;  %v2894_v58 = vpop.f32.mrf.mxu1  ;;  %v1892_v3 = vmax.f32 %v3491_v0, %v2890_v39 }
 0x14e   :  { %2288 = vst.msk [vmem:[%s3994_s3 + $0x2c] sm:$0xf] %vm2276_vm3, %v2588_v44  ;;  %v2042_v6 = vmax.f32 %v1993_v24, 0.0  ;;  %v1940_v13 = vmax.f32 %v1842_v40, %v1891_v34  ;;  %v1942_v41 = vmax.f32 %v1844_v2, %v1893_v48  ;;  %v1845_v47 = vmax.f32 %v3505_v7, %v2794_v57 }
 0x14f   :  { %2290 = vst.msk [vmem:[%s3994_s3 + $0x34] sm:$0xf] %vm2276_vm3, %v2590_v55  ;;  %v2044_v4 = vmax.f32 %v1995_v33, 0.0  ;;  %v1303_v23 = vpop.f32.mrf.mxu0  ;;  %v1703_v25 = vpop.f32.mrf.mxu1  ;;  %v1896_v52 = vmax.f32 %v3507_v8, %v2894_v58 }
 0x150   :  { %v2589_v27 = vpack.c.bf16 %v2042_v6, %v2042_v6  ;;  %v1996_v16 = vadd.f32 %v3646_v28, %v1940_v13  ;;  %v1998_v30 = vadd.f32 %v3646_v28, %v1942_v41  ;;  %v1843_v49 = vmax.f32 %v3509_v9, %v1303_v23  ;;  %v4050_v13 = vld [vmem:[#allocation5_spill] sm:$0xff] }
 0x151   :  { %v2591_v32 = vpack.c.bf16 %v2044_v4, %v2044_v4  ;;  %v1894_v50 = vmax.f32 %v3511_v10, %v1703_v25  ;;  %v2797_v38 = vpop.f32.mrf.mxu0  ;;  %v2897_v62 = vpop.f32.mrf.mxu1  ;;  %v1895_v9 = vmax.f32 %v3519_v14, %v2893_v35 }
 0x152   :  { %2289 = vst.msk [vmem:[%s3994_s3 + $0x30] sm:$0xf] %vm2276_vm3, %v2589_v27  ;;  %v2045_v0 = vmax.f32 %v1996_v16, 0.0  ;;  %v2047_v39 = vmax.f32 %v1998_v30, 0.0  ;;  %v1941_v26 = vmax.f32 %v1843_v49, %v1892_v3  ;;  %v1848_v51 = vmax.f32 %v3533_v21, %v2797_v38 }
 0x153   :  { %2291 = vst.msk [vmem:[%s3994_s3 + $0x38] sm:$0xf] %vm2276_vm3, %v2591_v32  ;;  %v1943_v7 = vmax.f32 %v1845_v47, %v1894_v50  ;;  %v1316_v42 = vpop.f32.mrf.mxu0  ;;  %v1716_v10 = vpop.f32.mrf.mxu1  ;;  %v4052_v50 = vld [vmem:[#allocation8_spill] sm:$0xff] }
 0x154   :  { %v2592_v59 = vpack.c.bf16 %v2045_v0, %v2045_v0  ;;  %v2594_v5 = vpack.c.bf16 %v2047_v39, %v2047_v39  ;;  %v1997_v31 = vadd.f32 %v3646_v28, %v1941_v26  ;;  %v1846_v60 = vmax.f32 %v3513_v11, %v1316_v42  ;;  %v4053_v0 = vld [vmem:[#allocation6_spill] sm:$0xff]  ;;  %v4054_v26 = vld [vmem:[#allocation9_spill] sm:$0xff] }
 0x155   :  { %v1999_v54 = vadd.f32 %v3646_v28, %v1943_v7  ;;  %v1897_v20 = vmax.f32 %v3515_v12, %v1716_v10  ;;  %v2798_v36 = vpop.f32.mrf.mxu0  ;;  %v2898_v61 = vpop.f32.mrf.mxu1 }
 0x156   :  { %2292 = vst.msk [vmem:[%s3994_s3 + $0x3c] sm:$0xf] %vm2276_vm3, %v2592_v59  ;;  %2294 = vst.msk [vmem:[%s3994_s3 + $0x44] sm:$0xf] %vm2276_vm3, %v2594_v5  ;;  %v2046_v14 = vmax.f32 %v1997_v31, 0.0  ;;  %v1944_v11 = vmax.f32 %v1846_v60, %v1895_v9  ;;  %v1849_v12 = vmax.f32 %v3521_v15, %v2798_v36  ;;  %v4055_v5 = vld [vmem:[#allocation12_spill] sm:$0xff] }
 0x157   :  { %v2048_v45 = vmax.f32 %v1999_v54, 0.0  ;;  %v1946_v21 = vmax.f32 %v1848_v51, %v1897_v20  ;;  %v1319_v46 = vpop.f32.mrf.mxu0  ;;  %v1719_v35 = vpop.f32.mrf.mxu1  ;;  %v4056_v51 = vld [vmem:[#allocation19_spill] sm:$0xff] }
 0x158   :  { %v2593_v56 = vpack.c.bf16 %v2046_v14, %v2046_v14  ;;  %v2000_v1 = vadd.f32 %v3646_v28, %v1944_v11  ;;  %v1847_v34 = vmax.f32 %v3525_v17, %v1319_v46  ;;  %v1898_v37 = vmax.f32 %v3527_v18, %v1719_v35 }
 0x159   :  { %v2595_v63 = vpack.c.bf16 %v2048_v45, %v2048_v45  ;;  %v2002_v2 = vadd.f32 %v3646_v28, %v1946_v21  ;;  %v2801_v53 = vpop.f32.mrf.mxu0  ;;  %v2901_v43 = vpop.f32.mrf.mxu1  ;;  %v1899_v17 = vmax.f32 %v3535_v22, %v2897_v62  ;;  %v4058_v21 = vld [vmem:[#allocation11_spill] sm:$0xff] }
 0x15a   :  { %2293 = vst.msk [vmem:[%s3994_s3 + $0x40] sm:$0xf] %vm2276_vm3, %v2593_v56  ;;  %v2049_v8 = vmax.f32 %v2000_v1, 0.0  ;;  %v1945_v15 = vmax.f32 %v1847_v34, %v1896_v52  ;;  %v1947_v44 = vmax.f32 %v1849_v12, %v1898_v37  ;;  %v1852_v6 = vmax.f32 %v3549_v29, %v2801_v53  ;;  %v4057_v52 = vld [vmem:[#allocation10_spill] sm:$0xff] }
 0x15b   :  { %2295 = vst.msk [vmem:[%s3994_s3 + $0x48] sm:$0xf] %vm2276_vm3, %v2595_v63  ;;  %v2051_v18 = vmax.f32 %v2002_v2, 0.0  ;;  %v1332_v24 = vpop.f32.mrf.mxu0  ;;  %v1732_v40 = vpop.f32.mrf.mxu1  ;;  %v1903_v31 = vmax.f32 %v4055_v5, %v2901_v43  ;;  %v4059_v2 = vld [vmem:[#allocation7_spill] sm:$0xff] }
 0x15c   :  { %v2596_v48 = vpack.c.bf16 %v2049_v8, %v2049_v8  ;;  %v2001_v55 = vadd.f32 %v3646_v28, %v1945_v15  ;;  %v2003_v33 = vadd.f32 %v3646_v28, %v1947_v44  ;;  %v1850_v57 = vmax.f32 %v3529_v19, %v1332_v24  ;;  %v4051_v19 = vld [vmem:[#allocation4_spill] sm:$0xff]  ;;  %v4060_v24 = vld [vmem:[#allocation15_spill] sm:$0xff] }
 0x15d   :  { %v2598_v58 = vpack.c.bf16 %v2051_v18, %v2051_v18  ;;  %v1901_v41 = vmax.f32 %v4050_v13, %v1732_v40  ;;  %v2802_v3 = vpop.f32.mrf.mxu0  ;;  %v2902_v4 = vpop.f32.mrf.mxu1  ;;  %v1900_v27 = vmax.f32 %v4051_v19, %v2898_v61 }
 0x15e   :  { %2296 = vst.msk [vmem:[%s3994_s3 + $0x4c] sm:$0xf] %vm2276_vm3, %v2596_v48  ;;  %v2050_v22 = vmax.f32 %v2001_v55, 0.0  ;;  %v2052_v23 = vmax.f32 %v2003_v33, 0.0  ;;  %v1948_v25 = vmax.f32 %v1850_v57, %v1899_v17  ;;  %v1853_v39 = vmax.f32 %v4053_v0, %v2802_v3  ;;  %v4061_v55 = vld [vmem:[#allocation13_spill] sm:$0xff]  ;;  %v4062_v57 = vld [vmem:[#allocation16_spill] sm:$0xff] }
 0x15f   :  { %2298 = vst.msk [vmem:[%s3994_s3 + $0x54] sm:$0xf] %vm2276_vm3, %v2598_v58  ;;  %v1950_v29 = vmax.f32 %v1852_v6, %v1901_v41  ;;  %v1335_v16 = vpop.f32.mrf.mxu0  ;;  %v1735_v30 = vpop.f32.mrf.mxu1  ;;  %v1904_v53 = vmax.f32 %v4059_v2, %v2902_v4 }
 0x160   :  { %v2597_v49 = vpack.c.bf16 %v2050_v22, %v2050_v22  ;;  %v2599_v32 = vpack.c.bf16 %v2052_v23, %v2052_v23  ;;  %v2004_v47 = vadd.f32 %v3646_v28, %v1948_v25  ;;  %v1851_v38 = vmax.f32 %v4052_v50, %v1335_v16  ;;  %v4063_v22 = vld [vmem:[#allocation20_spill] sm:$0xff]  ;;  %v4065_v50 = vld [vmem:[#allocation27_spill] sm:$0xff] }
 0x161   :  { %v2006_v62 = vadd.f32 %v3646_v28, %v1950_v29  ;;  %v1902_v9 = vmax.f32 %v4054_v26, %v1735_v30  ;;  %v2805_v7 = vpop.f32.mrf.mxu0  ;;  %v2905_v42 = vpop.f32.mrf.mxu1 }
 0x162   :  { %2297 = vst.msk [vmem:[%s3994_s3 + $0x50] sm:$0xf] %vm2276_vm3, %v2597_v49  ;;  %2299 = vst.msk [vmem:[%s3994_s3 + $0x58] sm:$0xf] %vm2276_vm3, %v2599_v32  ;;  %v2053_v10 = vmax.f32 %v2004_v47, 0.0  ;;  %v1949_v59 = vmax.f32 %v1851_v38, %v1900_v27  ;;  %v1856_v20 = vmax.f32 %v4056_v51, %v2805_v7  ;;  %v1907_v23 = vmax.f32 %v4063_v22, %v2905_v42  ;;  %v4064_v49 = vld [vmem:[#allocation17_spill] sm:$0xff] }
 0x163   :  { %v2055_v60 = vmax.f32 %v2006_v62, 0.0  ;;  %v1951_v54 = vmax.f32 %v1853_v39, %v1902_v9  ;;  %v1348_v36 = vpop.f32.mrf.mxu0  ;;  %v1748_v61 = vpop.f32.mrf.mxu1  ;;  %v4066_v62 = vld [vmem:[#allocation18_spill] sm:$0xff] }
 0x164   :  { %v2600_v14 = vpack.c.bf16 %v2053_v10, %v2053_v10  ;;  %v2005_v11 = vadd.f32 %v3646_v28, %v1949_v59  ;;  %v1854_v45 = vmax.f32 %v4057_v52, %v1348_v36  ;;  %v1905_v12 = vmax.f32 %v4058_v21, %v1748_v61  ;;  %v4067_v42 = vld [vmem:[#allocation14_spill] sm:$0xff]  ;;  %v4069_v61 = vld [vmem:[#allocation23_spill] sm:$0xff] }
 0x165   :  { %v2602_v46 = vpack.c.bf16 %v2055_v60, %v2055_v60  ;;  %v2007_v35 = vadd.f32 %v3646_v28, %v1951_v54  ;;  %v2806_v56 = vpop.f32.mrf.mxu0  ;;  %v2906_v1 = vpop.f32.mrf.mxu1 }
 0x166   :  { %2300 = vst.msk [vmem:[%s3994_s3 + $0x5c] sm:$0xf] %vm2276_vm3, %v2600_v14  ;;  %v2054_v34 = vmax.f32 %v2005_v11, 0.0  ;;  %v1952_v37 = vmax.f32 %v1854_v45, %v1903_v31  ;;  %v1954_v63 = vmax.f32 %v1856_v20, %v1905_v12  ;;  %v1857_v33 = vmax.f32 %v4061_v55, %v2806_v56  ;;  %v4068_v31 = vld [vmem:[#allocation21_spill] sm:$0xff]  ;;  %v4070_v11 = vld [vmem:[#allocation24_spill] sm:$0xff] }
 0x167   :  { %2302 = vst.msk [vmem:[%s3994_s3 + $0x64] sm:$0xf] %vm2276_vm3, %v2602_v46  ;;  %v2056_v43 = vmax.f32 %v2007_v35, 0.0  ;;  %v1351_v8 = vpop.f32.mrf.mxu0  ;;  %v1751_v15 = vpop.f32.mrf.mxu1  ;;  %v1908_v10 = vmax.f32 %v4067_v42, %v2906_v1 }
 0x168   :  { %v2601_v44 = vpack.c.bf16 %v2054_v34, %v2054_v34  ;;  %v2008_v17 = vadd.f32 %v3646_v28, %v1952_v37  ;;  %v2010_v18 = vadd.f32 %v3646_v28, %v1954_v63  ;;  %v1855_v40 = vmax.f32 %v4060_v24, %v1351_v8  ;;  %v4071_v34 = vld [vmem:[#allocation28_spill] sm:$0xff]  ;;  %v4073_v24 = vld [vmem:[#allocation35_spill] sm:$0xff] }
 0x169   :  { %v2603_v48 = vpack.c.bf16 %v2056_v43, %v2056_v43  ;;  %v1906_v58 = vmax.f32 %v4062_v57, %v1751_v15  ;;  %v2809_v6 = vpop.f32.mrf.mxu0  ;;  %v2909_v13 = vpop.f32.mrf.mxu1 }
 0x16a   :  { %2301 = vst.msk [vmem:[%s3994_s3 + $0x60] sm:$0xf] %vm2276_vm3, %v2601_v44  ;;  %v2057_v41 = vmax.f32 %v2008_v17, 0.0  ;;  %v2059_v3 = vmax.f32 %v2010_v18, 0.0  ;;  %v1953_v4 = vmax.f32 %v1855_v40, %v1904_v53  ;;  %v1860_v38 = vmax.f32 %v4065_v50, %v2809_v6  ;;  %v4072_v44 = vld [vmem:[#allocation25_spill] sm:$0xff] }
 0x16b   :  { %2303 = vst.msk [vmem:[%s3994_s3 + $0x68] sm:$0xf] %vm2276_vm3, %v2603_v48  ;;  %v1955_v25 = vmax.f32 %v1857_v33, %v1906_v58  ;;  %v1364_v19 = vpop.f32.mrf.mxu0  ;;  %v1764_v27 = vpop.f32.mrf.mxu1  ;;  %v1911_v37 = vmax.f32 %v4071_v34, %v2909_v13  ;;  %v4074_v48 = vld [vmem:[#allocation26_spill] sm:$0xff] }
 0x16c   :  { %v2604_v29 = vpack.c.bf16 %v2057_v41, %v2057_v41  ;;  %v2606_v16 = vpack.c.bf16 %v2059_v3, %v2059_v3  ;;  %v2009_v30 = vadd.f32 %v3646_v28, %v1953_v4  ;;  %v1858_v32 = vmax.f32 %v4064_v49, %v1364_v19  ;;  %v4075_v41 = vld [vmem:[#allocation22_spill] sm:$0xff]  ;;  %v4077_v49 = vld [vmem:[#allocation29_spill] sm:$0xff] }
 0x16d   :  { %v2011_v47 = vadd.f32 %v3646_v28, %v1955_v25  ;;  %v1909_v0 = vmax.f32 %v4066_v62, %v1764_v27  ;;  %v2810_v39 = vpop.f32.mrf.mxu0  ;;  %v2910_v26 = vpop.f32.mrf.mxu1 }
 0x16e   :  { %2304 = vst.msk [vmem:[%s3994_s3 + $0x6c] sm:$0xf] %vm2276_vm3, %v2604_v29  ;;  %2306 = vst.msk [vmem:[%s3994_s3 + $0x74] sm:$0xf] %vm2276_vm3, %v2606_v16  ;;  %v2058_v9 = vmax.f32 %v2009_v30, 0.0  ;;  %v1956_v7 = vmax.f32 %v1858_v32, %v1907_v23  ;;  %v1861_v60 = vmax.f32 %v4068_v31, %v2810_v39  ;;  %v1912_v3 = vmax.f32 %v4075_v41, %v2910_v26  ;;  %v4076_v29 = vld [vmem:[#allocation31_spill] sm:$0xff] }
 0x16f   :  { %v2060_v59 = vmax.f32 %v2011_v47, 0.0  ;;  %v1958_v5 = vmax.f32 %v1860_v38, %v1909_v0  ;;  %v1367_v54 = vpop.f32.mrf.mxu0  ;;  %v1767_v51 = vpop.f32.mrf.mxu1  ;;  %v4078_v47 = vld [vmem:[#allocation32_spill] sm:$0xff] }
 0x170   :  { %v2605_v20 = vpack.c.bf16 %v2058_v9, %v2058_v9  ;;  %v2012_v36 = vadd.f32 %v3646_v28, %v1956_v7  ;;  %v1859_v14 = vmax.f32 %v4069_v61, %v1367_v54  ;;  %v1910_v52 = vmax.f32 %v4070_v11, %v1767_v51  ;;  %v4079_v26 = vld [vmem:[#allocation36_spill] sm:$0xff]  ;;  %v4081_v51 = vld [vmem:[#allocation33_spill] sm:$0xff] }
 0x171   :  { %v2607_v45 = vpack.c.bf16 %v2060_v59, %v2060_v59  ;;  %v2014_v21 = vadd.f32 %v3646_v28, %v1958_v5  ;;  %v2813_v12 = vpop.f32.mrf.mxu0  ;;  %v2913_v46 = vpop.f32.mrf.mxu1 }
 0x172   :  { %2305 = vst.msk [vmem:[%s3994_s3 + $0x70] sm:$0xf] %vm2276_vm3, %v2605_v20  ;;  %v2061_v35 = vmax.f32 %v2012_v36, 0.0  ;;  %v1957_v56 = vmax.f32 %v1859_v14, %v1908_v10  ;;  %v1959_v1 = vmax.f32 %v1861_v60, %v1910_v52  ;;  %v1864_v40 = vmax.f32 %v4073_v24, %v2813_v12  ;;  %v4080_v10 = vld [vmem:[#allocation43_spill] sm:$0xff]  ;;  %v4082_v36 = vld [vmem:[#allocation34_spill] sm:$0xff] }
 0x173   :  { %2307 = vst.msk [vmem:[%s3994_s3 + $0x78] sm:$0xf] %vm2276_vm3, %v2607_v45  ;;  %v2063_v63 = vmax.f32 %v2014_v21, 0.0  ;;  %v1380_v2 = vpop.f32.mrf.mxu0  ;;  %v1780_v53 = vpop.f32.mrf.mxu1  ;;  %v1915_v9 = vmax.f32 %v4079_v26, %v2913_v46 }
 0x174   :  { %v2608_v43 = vpack.c.bf16 %v2061_v35, %v2061_v35  ;;  %v2013_v8 = vadd.f32 %v3646_v28, %v1957_v56  ;;  %v2015_v15 = vadd.f32 %v3646_v28, %v1959_v1  ;;  %v1862_v17 = vmax.f32 %v4072_v44, %v1380_v2  ;;  %v4083_v35 = vld [vmem:[#allocation30_spill] sm:$0xff]  ;;  %v4085_v44 = vld [vmem:[#allocation37_spill] sm:$0xff] }
 0x175   :  { %v2610_v18 = vpack.c.bf16 %v2063_v63, %v2063_v63  ;;  %v1913_v55 = vmax.f32 %v4074_v48, %v1780_v53  ;;  %v2814_v33 = vpop.f32.mrf.mxu0  ;;  %v2914_v57 = vpop.f32.mrf.mxu1 }
 0x176   :  { %2308 = vst.msk [vmem:[%s3994_s3 + $0x7c] sm:$0xf] %vm2276_vm3, %v2608_v43  ;;  %v2062_v58 = vmax.f32 %v2013_v8, 0.0  ;;  %v2064_v6 = vmax.f32 %v2015_v15, 0.0  ;;  %v1960_v13 = vmax.f32 %v1862_v17, %v1911_v37  ;;  %v1865_v32 = vmax.f32 %v4077_v49, %v2814_v33  ;;  %v4084_v43 = vld [vmem:[#allocation39_spill] sm:$0xff] }
 0x177   :  { %2310 = vst.msk [vmem:[%s3994_s3 + $0x84] sm:$0xf] %vm2276_vm3, %v2610_v18  ;;  %v1962_v4 = vmax.f32 %v1864_v40, %v1913_v55  ;;  %v1383_v22 = vpop.f32.mrf.mxu0  ;;  %v1783_v23 = vpop.f32.mrf.mxu1  ;;  %v1916_v56 = vmax.f32 %v4083_v35, %v2914_v57  ;;  %v4086_v18 = vld [vmem:[#allocation40_spill] sm:$0xff] }
 0x178   :  { %v2609_v25 = vpack.c.bf16 %v2062_v58, %v2062_v58  ;;  %v2611_v19 = vpack.c.bf16 %v2064_v6, %v2064_v6  ;;  %v2016_v27 = vadd.f32 %v3646_v28, %v1960_v13  ;;  %v1863_v16 = vmax.f32 %v4076_v29, %v1383_v22  ;;  %v4087_v58 = vld [vmem:[#allocation44_spill] sm:$0xff]  ;;  %v4089_v29 = vld [vmem:[#allocation51_spill] sm:$0xff] }
 0x179   :  { %v2018_v30 = vadd.f32 %v3646_v28, %v1962_v4  ;;  %v1914_v50 = vmax.f32 %v4078_v47, %v1783_v23  ;;  %v2817_v38 = vpop.f32.mrf.mxu0  ;;  %v2917_v62 = vpop.f32.mrf.mxu1 }
 0x17a   :  { %2309 = vst.msk [vmem:[%s3994_s3 + $0x80] sm:$0xf] %vm2276_vm3, %v2609_v25  ;;  %2311 = vst.msk [vmem:[%s3994_s3 + $0x88] sm:$0xf] %vm2276_vm3, %v2611_v19  ;;  %v2065_v0 = vmax.f32 %v2016_v27, 0.0  ;;  %v1961_v39 = vmax.f32 %v1863_v16, %v1912_v3  ;;  %v1868_v59 = vmax.f32 %v4080_v10, %v2817_v38  ;;  %v1919_v6 = vmax.f32 %v4087_v58, %v2917_v62  ;;  %v4088_v25 = vld [vmem:[#allocation41_spill] sm:$0xff] }
 0x17b   :  { %v2067_v7 = vmax.f32 %v2018_v30, 0.0  ;;  %v1963_v42 = vmax.f32 %v1865_v32, %v1914_v50  ;;  %v1396_v5 = vpop.f32.mrf.mxu0  ;;  %v1796_v31 = vpop.f32.mrf.mxu1  ;;  %v4090_v30 = vld [vmem:[#allocation42_spill] sm:$0xff]  ;;  %v4102_v58 = vld [vmem:[#allocation55_spill] sm:$0xff] }
 0x17c   :  { %v2612_v60 = vpack.c.bf16 %v2065_v0, %v2065_v0  ;;  %v2017_v54 = vadd.f32 %v3646_v28, %v1961_v39  ;;  %v1866_v20 = vmax.f32 %v4081_v51, %v1396_v5  ;;  %v1917_v61 = vmax.f32 %v4082_v36, %v1796_v31  ;;  %v4091_v62 = vld [vmem:[#allocation38_spill] sm:$0xff]  ;;  %v4093_v31 = vld [vmem:[#allocation47_spill] sm:$0xff] }
 0x17d   :  { %v2614_v14 = vpack.c.bf16 %v2067_v7, %v2067_v7  ;;  %v2019_v11 = vadd.f32 %v3646_v28, %v1963_v42  ;;  %v2818_v52 = vpop.f32.mrf.mxu0  ;;  %v2918_v45 = vpop.f32.mrf.mxu1  ;;  %v4096_v36 = vld [vmem:[#allocation2_spill] sm:$0xff] }
 0x17e   :  { %2312 = vst.msk [vmem:[%s3994_s3 + $0x8c] sm:$0xf] %vm2276_vm3, %v2612_v60  ;;  %v2066_v21 = vmax.f32 %v2017_v54, 0.0  ;;  %v1964_v12 = vmax.f32 %v1866_v20, %v1915_v9  ;;  %v1966_v46 = vmax.f32 %v1868_v59, %v1917_v61  ;;  %v1869_v17 = vmax.f32 %v4085_v44, %v2818_v52  ;;  %v4092_v9 = vld [vmem:[#allocation45_spill] sm:$0xff]  ;;  %v4094_v54 = vld [vmem:[#allocation48_spill] sm:$0xff] }
 0x17f   :  { %2314 = vst.msk [vmem:[%s3994_s3 + $0x94] sm:$0xf] %vm2276_vm3, %v2614_v14  ;;  %v2068_v1 = vmax.f32 %v2019_v11, 0.0  ;;  %v1399_v34 = vpop.f32.mrf.mxu0  ;;  %v1799_v37 = vpop.f32.mrf.mxu1  ;;  %v1920_v0 = vmax.f32 %v4091_v62, %v2918_v45  ;;  %v4095_v20 = vld [vmem:[#allocation56_spill] sm:$0xff] }
 0x180   :  { %v2613_v63 = vpack.c.bf16 %v2066_v21, %v2066_v21  ;;  %v2020_v2 = vadd.f32 %v3646_v28, %v1964_v12  ;;  %v2022_v53 = vadd.f32 %v3646_v28, %v1966_v46  ;;  %v1867_v8 = vmax.f32 %v4084_v43, %v1399_v34  ;;  %v4097_v46 = vld [vmem:[#allocation50_spill] sm:$0xff]  ;;  %v4099_v43 = vld [vmem:[#allocation3_spill] sm:$0xff] }
 0x181   :  { %v2615_v15 = vpack.c.bf16 %v2068_v1, %v2068_v1  ;;  %v1918_v24 = vmax.f32 %v4086_v18, %v1799_v37  ;;  %v2821_v40 = vpop.f32.mrf.mxu0  ;;  %v2921_v48 = vpop.f32.mrf.mxu1  ;;  %v1827_v61 = vmax.f32 %v4096_v36, %v4095_v20  ;;  %v4101_v18 = vld [vmem:[#allocation49_spill] sm:$0xff] }
 0x182   :  { %2313 = vst.msk [vmem:[%s3994_s3 + $0x90] sm:$0xf] %vm2276_vm3, %v2613_v63  ;;  %v2069_v55 = vmax.f32 %v2020_v2, 0.0  ;;  %v2071_v33 = vmax.f32 %v2022_v53, 0.0  ;;  %v1965_v57 = vmax.f32 %v1867_v8, %v1916_v56  ;;  %v1872_v16 = vmax.f32 %v4089_v29, %v2821_v40  ;;  %v4098_v53 = vld [vmem:[#allocation53_spill] sm:$0xff] }
 0x183   :  { %2315 = vst.msk [vmem:[%s3994_s3 + $0x98] sm:$0xf] %vm2276_vm3, %v2615_v15  ;;  %v1967_v13 = vmax.f32 %v1869_v17, %v1918_v24  ;;  %v1412_v41 = vpop.f32.mrf.mxu0  ;;  %v1812_v3 = vpop.f32.mrf.mxu1  ;;  %v1828_v8 = vmax.f32 %v4099_v43, %v4098_v53  ;;  %v4100_v15 = vld [vmem:[#allocation52_spill] sm:$0xff] }
 0x184   :  { %v2616_v4 = vpack.c.bf16 %v2069_v55, %v2069_v55  ;;  %v2618_v22 = vpack.c.bf16 %v2071_v33, %v2071_v33  ;;  %v2021_v23 = vadd.f32 %v3646_v28, %v1965_v57  ;;  %v1870_v19 = vmax.f32 %v4088_v25, %v1412_v41 }
 0x185   :  { %v2023_v27 = vadd.f32 %v3646_v28, %v1967_v13  ;;  %v1921_v49 = vmax.f32 %v4090_v30, %v1812_v3  ;;  %v2822_v32 = vpop.f32.mrf.mxu0  ;;  %v2922_v47 = vpop.f32.mrf.mxu1  ;;  %v1923_v44 = vmax.f32 %v4100_v15, %v2921_v48 }
 0x186   :  { %2316 = vst.msk [vmem:[%s3994_s3 + $0x9c] sm:$0xf] %vm2276_vm3, %v2616_v4  ;;  %2318 = vst.msk [vmem:[%s3994_s3 + $0xa4] sm:$0xf] %vm2276_vm3, %v2618_v22  ;;  %v2070_v50 = vmax.f32 %v2021_v23, 0.0  ;;  %v1968_v38 = vmax.f32 %v1870_v19, %v1919_v6  ;;  %v1873_v7 = vmax.f32 %v4092_v9, %v2822_v32  ;;  %v4103_v23 = vld [vmem:[#allocation46_spill] sm:$0xff] }
 0x187   :  { %v2072_v39 = vmax.f32 %v2023_v27, 0.0  ;;  %v1970_v26 = vmax.f32 %v1872_v16, %v1921_v49  ;;  %v1415_v42 = vpop.f32.mrf.mxu0  ;;  %v1815_v10 = vpop.f32.mrf.mxu1  ;;  %v1924_v25 = vmax.f32 %v4103_v23, %v2922_v47  ;;  %v4104_v27 = vld [vmem:[#allocation54_spill] sm:$0xff] }
 0x188   :  { %v2617_v59 = vpack.c.bf16 %v2070_v50, %v2070_v50  ;;  %v2024_v5 = vadd.f32 %v3646_v28, %v1968_v38  ;;  %v1871_v60 = vmax.f32 %v4093_v31, %v1415_v42  ;;  %v1922_v51 = vmax.f32 %v4094_v54, %v1815_v10 }
 0x189   :  { %v2619_v14 = vpack.c.bf16 %v2072_v39, %v2072_v39  ;;  %v2026_v11 = vadd.f32 %v3646_v28, %v1970_v26  ;;  %v2825_v52 = vpop.f32.mrf.mxu0 }
 0x18a   :  { %2317 = vst.msk [vmem:[%s3994_s3 + $0xa0] sm:$0xf] %vm2276_vm3, %v2617_v59  ;;  %v2073_v45 = vmax.f32 %v2024_v5, 0.0  ;;  %v1969_v21 = vmax.f32 %v1871_v60, %v1920_v0  ;;  %v1971_v12 = vmax.f32 %v1873_v7, %v1922_v51  ;;  %v1876_v35 = vmax.f32 %v2825_v52, %v4097_v46 }
 0x18b   :  { %2319 = vst.msk [vmem:[%s3994_s3 + $0xa8] sm:$0xf] %vm2276_vm3, %v2619_v14  ;;  %v2075_v56 = vmax.f32 %v2026_v11, 0.0  ;;  %v1428_v1 = vpop.f32.mrf.mxu0 }
 0x18c   :  { %v2620_v34 = vpack.c.bf16 %v2073_v45, %v2073_v45  ;;  %v2025_v37 = vadd.f32 %v3646_v28, %v1969_v21  ;;  %v2027_v63 = vadd.f32 %v3646_v28, %v1971_v12  ;;  %v1925_v2 = vmax.f32 %v1827_v61, %v1876_v35 }
 0x18d   :  { %v2622_v17 = vpack.c.bf16 %v2075_v56, %v2075_v56  ;;  %v1874_v24 = vmax.f32 %v4101_v18, %v1428_v1  ;;  %v2826_v40 = vpop.f32.mrf.mxu0 }
 0x18e   :  { %2320 = vst.msk [vmem:[%s3994_s3 + $0xac] sm:$0xf] %vm2276_vm3, %v2620_v34  ;;  %v2074_v55 = vmax.f32 %v2025_v37, 0.0  ;;  %v2076_v33 = vmax.f32 %v2027_v63, 0.0  ;;  %v1981_v57 = vadd.f32 %v3646_v28, %v1925_v2  ;;  %v1877_v6 = vmax.f32 %v2826_v40, %v4102_v58 }
 0x18f   :  { %2322 = vst.msk [vmem:[%s3994_s3 + $0xb4] sm:$0xf] %vm2276_vm3, %v2622_v17  ;;  %v1972_v48 = vmax.f32 %v1874_v24, %v1923_v44  ;;  %v1431_v13 = vpop.f32.mrf.mxu0 }
 0x190   :  { %v2621_v41 = vpack.c.bf16 %v2074_v55, %v2074_v55  ;;  %v2623_v3 = vpack.c.bf16 %v2076_v33, %v2076_v33  ;;  %v2030_v4 = vmax.f32 %v1981_v57, 0.0  ;;  %v1926_v22 = vmax.f32 %v1828_v8, %v1877_v6 }
 0x191   :  { %v2028_v19 = vadd.f32 %v3646_v28, %v1972_v48  ;;  %v1875_v29 = vmax.f32 %v4104_v27, %v1431_v13 }
 0x192   :  { %2321 = vst.msk [vmem:[%s3994_s3 + $0xb0] sm:$0xf] %vm2276_vm3, %v2621_v41  ;;  %2323 = vst.msk [vmem:[%s3994_s3 + $0xb8] sm:$0xf] %vm2276_vm3, %v2623_v3  ;;  %v2577_v16 = vpack.c.bf16 %v2030_v4, %v2030_v4  ;;  %v1982_v30 = vadd.f32 %v3646_v28, %v1926_v22 }
 0x193   :  { %v2077_v49 = vmax.f32 %v2028_v19, 0.0  ;;  %v1973_v32 = vmax.f32 %v1875_v29, %v1924_v25 }
 0x194   :  { %2277 = vst.msk [vmem:[%s3994_s3] sm:$0xf] %vm2276_vm3, %v2577_v16  ;;  %v2031_v47 = vmax.f32 %v1982_v30, 0.0 }
 0x195   :  { %v2624_v50 = vpack.c.bf16 %v2077_v49, %v2077_v49  ;;  %v2029_v38 = vadd.f32 %v3646_v28, %v1973_v32 }
 0x196   :  { %v2578_v62 = vpack.c.bf16 %v2031_v47, %v2031_v47 }
 0x197   :  { %2324 = vst.msk [vmem:[%s3994_s3 + $0xbc] sm:$0xf] %vm2276_vm3, %v2624_v50  ;;  %v2078_v0 = vmax.f32 %v2029_v38, 0.0 }
 0x198   :  { %2278 = vst.msk [vmem:[%s3994_s3 + $0x4] sm:$0xf] %vm2276_vm3, %v2578_v62 }
 0x199   :  { %v2625_v39 = vpack.c.bf16 %v2078_v0, %v2078_v0 }
 0x19b   :  { %2325 = vst.msk [vmem:[%s3994_s3 + $0xc0] sm:$0xf] %vm2276_vm3, %v2625_v39 }

// kernel: cnn_forward.3
= control target key start
LH: loop header
LB: loop body
LE: loop exit
PB: predicated region body
PF: predicated region fallthrough
CT: control target
= control target key end

     0   :  { %v731_v27 = vlaneseq  ;;  %v5354_v35 = vmov 1966171168   ;;  %vm5356_vm0 = vmmov 0   ;;  %s6551_s0 = inlined_call_operand.vmem [shape: bf16[2,5488], index: 0, kind: input, shape index: {}]   ;;  %s6552_s1 = inlined_call_operand.vmem [shape: bf16[5488,100], index: 1, kind: input, shape index: {}]   ;;  %s6553_s2 = inlined_call_operand.vmem [shape: f32[1,100], index: 2, kind: input, shape index: {}]   ;;  %s6554_s3 = inlined_call_operand.vmem [shape: bf16[100,10], index: 3, kind: input, shape index: {}]   ;;  %s6555_s4 = inlined_call_operand.vmem [shape: f32[1,10], index: 4, kind: input, shape index: {}]   ;;  %s6556_s5 = inlined_call_operand.hbm [shape: f32[2,10], index: 5, kind: output, shape index: {}]  }
   0x1   :  { %v4977_v0 = vld [vmem:[%s6552_s1 + $0x78] sm:$0xff]   ;;  %v4981_v4 = vld [vmem:[%s6552_s1 + $0x70] sm:$0xff]   ;;  %v4985_v8 = vld [vmem:[%s6552_s1 + $0x68] sm:$0xff]   ;;  %v729_v36 = vunpack.c.l.s4 %v5354_v35 }
   0x2   :  { %v4978_v1 = vld [vmem:[%s6552_s1 + $0x38] sm:$0xff]   ;;  %4459 = vmatprep.subr.bf16.mxu0 %v4977_v0  ;;  %v4982_v5 = vld [vmem:[%s6552_s1 + $0x30] sm:$0xff]   ;;  %v4986_v9 = vld [vmem:[%s6552_s1 + $0x28] sm:$0xff]   ;;  %v732_v32 = vshrl.u32 %v731_v27, 7 }
   0x3   :  { %v4979_v2 = vld [vmem:[%s6552_s1 + $0xf8] sm:$0xff]   ;;  %4460 = vmatpush3.bf16.msra.mxu0 %v4978_v1  ;;  %v4983_v6 = vld [vmem:[%s6552_s1 + $0xf0] sm:$0xff]   ;;  %v4987_v10 = vld [vmem:[%s6552_s1 + $0xe8] sm:$0xff]   ;;  %v730_v39 = vunpack.c.0.s8 %v729_v36 }
   0x4   :  { %v4980_v3 = vld [vmem:[%s6552_s1 + $0xb8] sm:$0xff]   ;;  %4481 = vmatprep.subr.bf16.mxu1 %v4979_v2  ;;  %4461 = vmatprep.subr.bf16.mxu0 %v4981_v4  ;;  %v4984_v7 = vld [vmem:[%s6552_s1 + $0xb0] sm:$0xff]   ;;  %v4988_v11 = vld [vmem:[%s6552_s1 + $0xa8] sm:$0xff]  }
   0x5   :  { %4482 = vmatpush3.bf16.msra.mxu1 %v4980_v3  ;;  %v4989_v12 = vld [vmem:[%s6552_s1 + $0x60] sm:$0xff]   ;;  %v4993_v16 = vld [vmem:[%s6552_s1 + $0x58] sm:$0xff]   ;;  %v4997_v20 = vld [vmem:[%s6552_s1 + $0x50] sm:$0xff]   ;;  %v5493_v41 = vsub.s32 %v730_v39, %v732_v32 }
   0x6   :  { %4483 = vmatprep.subr.bf16.mxu1 %v4983_v6  ;;  %v4990_v13 = vld [vmem:[%s6552_s1 + $0x20] sm:$0xff]   ;;  %v4994_v17 = vld [vmem:[%s6552_s1 + $0x18] sm:$0xff]   ;;  %v4998_v21 = vld [vmem:[%s6552_s1 + $0x10] sm:$0xff]  }
   0x7   :  { %4462 = vmatpush3.bf16.msra.mxu0 %v4982_v5  ;;  %v4991_v14 = vld [vmem:[%s6552_s1 + $0xe0] sm:$0xff]   ;;  %v4995_v18 = vld [vmem:[%s6552_s1 + $0xd8] sm:$0xff]   ;;  %v4999_v22 = vld [vmem:[%s6552_s1 + $0xd0] sm:$0xff]  }
   0x8   :  { %4463 = vmatprep.subr.bf16.mxu0 %v4985_v8  ;;  %v4992_v15 = vld [vmem:[%s6552_s1 + $0xa0] sm:$0xff]   ;;  %v4996_v19 = vld [vmem:[%s6552_s1 + $0x98] sm:$0xff]   ;;  %v5000_v23 = vld [vmem:[%s6552_s1 + $0x90] sm:$0xff]  }
   0x9   :  { %4484 = vmatpush3.bf16.msra.mxu1 %v4984_v7  ;;  %v5001_v24 = vld [vmem:[%s6552_s1 + $0x48] sm:$0xff]   ;;  %v5005_v29 = vld [vmem:[%s6552_s1 + $0x40] sm:$0xff]   ;;  %v5010_v37 = vld [vmem:[%s6552_s1 + $0x178] sm:$0xff]  }
   0xa   :  { %4485 = vmatprep.subr.bf16.mxu1 %v4987_v10  ;;  %v5002_v25 = vld [vmem:[%s6552_s1 + $0x8] sm:$0xff]   ;;  %v5006_v30 = vld [vmem:[%s6552_s1] sm:$0xff]   ;;  %v5012_v40 = vld [vmem:[%s6552_s1 + $0x1f8] sm:$0xff]  }
   0xb   :  { %4464 = vmatpush3.bf16.msra.mxu0 %v4986_v9  ;;  %v5003_v26 = vld [vmem:[%s6552_s1 + $0xc8] sm:$0xff]   ;;  %v5007_v31 = vld [vmem:[%s6552_s1 + $0xc0] sm:$0xff]   ;;  %v5011_v47 = vld [vmem:[%s6552_s1 + $0x138] sm:$0xff]  }
   0xc   :  { %4465 = vmatprep.subr.bf16.mxu0 %v4989_v12  ;;  %v5004_v28 = vld [vmem:[%s6552_s1 + $0x88] sm:$0xff]   ;;  %v22_v33 = vld [vmem:[%s6551_s0] sm:$0xff]  ;;  %v5013_v49 = vld [vmem:[%s6552_s1 + $0x1b8] sm:$0xff]  }
   0xd   :  { %4486 = vmatpush3.bf16.msra.mxu1 %v4988_v11  ;;  %v5009_v34 = vld [vmem:[%s6552_s1 + $0x80] sm:$0xff]   ;;  %v727_v38 = vcombine.high %v22_v33, %v22_v33  ;;  %v734_v42 = vrot.slane %v22_v33, %v5493_v41  ;;  %v5014_v52 = vld [vmem:[%s6552_s1 + $0x170] sm:$0xff]   ;;  %v5018_v58 = vld [vmem:[%s6552_s1 + $0x168] sm:$0xff]  }
   0xe   :  { %4487 = vmatprep.subr.bf16.mxu1 %v4991_v14  ;;  %v5015_v54 = vld [vmem:[%s6552_s1 + $0x130] sm:$0xff]   ;;  %v5019_v59 = vld [vmem:[%s6552_s1 + $0x128] sm:$0xff]   ;;  %v5022_v62 = vld [vmem:[%s6552_s1 + $0x160] sm:$0xff]  }
   0xf   :  { %4466 = vmatpush3.bf16.msra.mxu0 %v4990_v13  ;;  %v5497_v43 = vrot.slane %v727_v38, %v5493_v41  ;;  %v742_v44 = vcombine.high %v734_v42, %v734_v42  ;;  %v750_v45 = vrot.slane %v734_v42, %v5493_v41  ;;  %v5016_v55 = vld [vmem:[%s6552_s1 + $0x1f0] sm:$0xff]   ;;  %v5020_v60 = vld [vmem:[%s6552_s1 + $0x1e8] sm:$0xff]   ;;  %v5023_v63 = vld [vmem:[%s6552_s1 + $0x120] sm:$0xff]  }
  0x10   :  { %4467 = vmatprep.subr.bf16.mxu0 %v4993_v16  ;;  %v5017_v57 = vld [vmem:[%s6552_s1 + $0x1b0] sm:$0xff]   ;;  %v5021_v61 = vld [vmem:[%s6552_s1 + $0x1a8] sm:$0xff]   ;;  %v5024_v0 = vld [vmem:[%s6552_s1 + $0x1e0] sm:$0xff]  }
  0x11   :  { %4488 = vmatpush3.bf16.msra.mxu1 %v4992_v15  ;;  %v743_v46 = vcombine.high %v5497_v43, %v5497_v43  ;;  %v764_v48 = vrot.slane %v742_v44, %v5493_v41  ;;  %v772_v51 = vcombine.high %v750_v45, %v750_v45  ;;  %v5025_v1 = vld [vmem:[%s6552_s1 + $0x1a0] sm:$0xff]   ;;  %v5026_v2 = vld [vmem:[%s6552_s1 + $0x158] sm:$0xff]   ;;  %v5030_v6 = vld [vmem:[%s6552_s1 + $0x150] sm:$0xff]  }
  0x12   :  { %4489 = vmatprep.subr.bf16.mxu1 %v4995_v18  ;;  %v5027_v3 = vld [vmem:[%s6552_s1 + $0x118] sm:$0xff]   ;;  %v5031_v7 = vld [vmem:[%s6552_s1 + $0x110] sm:$0xff]   ;;  %v5034_v10 = vld [vmem:[%s6552_s1 + $0x148] sm:$0xff]   ;;  %v757_v18 = vrot.slane %v5497_v43, %v5493_v41 }
  0x13   :  { %4468 = vmatpush3.bf16.msra.mxu0 %v4994_v17  ;;  %v771_v50 = vrot.slane %v743_v46, %v5493_v41  ;;  %3131 = vmatprep.mubr.bf16.mxu0 %v764_v48  ;;  %v774_v53 = vcombine.high %v764_v48, %v764_v48  ;;  %v5028_v4 = vld [vmem:[%s6552_s1 + $0x1d8] sm:$0xff]   ;;  %v5032_v8 = vld [vmem:[%s6552_s1 + $0x1d0] sm:$0xff]   ;;  %v5035_v11 = vld [vmem:[%s6552_s1 + $0x108] sm:$0xff]  }
  0x14   :  { %4469 = vmatprep.subr.bf16.mxu0 %v4997_v20  ;;  %v5029_v5 = vld [vmem:[%s6552_s1 + $0x198] sm:$0xff]   ;;  %v5033_v9 = vld [vmem:[%s6552_s1 + $0x190] sm:$0xff]   ;;  %v5036_v12 = vld [vmem:[%s6552_s1 + $0x1c8] sm:$0xff]  }
  0x15   :  { %4490 = vmatpush3.bf16.msra.mxu1 %v4996_v19  ;;  %v775_v56 = vcombine.high %v771_v50, %v771_v50  ;;  %3171 = vmatprep.mubr.bf16.mxu1 %v774_v53  ;;  %v5037_v13 = vld [vmem:[%s6552_s1 + $0x188] sm:$0xff]   ;;  %v5038_v14 = vld [vmem:[%s6552_s1 + $0x140] sm:$0xff]   ;;  %v5042_v19 = vld [vmem:[%s6552_s1 + $0x278] sm:$0xff]  }
  0x16   :  { %4491 = vmatprep.subr.bf16.mxu1 %v4999_v22  ;;  %v5039_v15 = vld [vmem:[%s6552_s1 + $0x100] sm:$0xff]   ;;  %v5043_v20 = vld [vmem:[%s6552_s1 + $0x238] sm:$0xff]   ;;  %v5049_v27 = vld [vmem:[%s6552_s1 + $0x2b0] sm:$0xff]  }
  0x17   :  { %4470 = vmatpush3.bf16.msra.mxu0 %v4998_v21  ;;  %v5040_v16 = vld [vmem:[%s6552_s1 + $0x1c0] sm:$0xff]   ;;  %v5044_v21 = vld [vmem:[%s6552_s1 + $0x2f8] sm:$0xff]   ;;  %v5063_v42 = vld [vmem:[%s6552_s1 + $0x210] sm:$0xff]  }
  0x18   :  { %4471 = vmatprep.subr.bf16.mxu0 %v5001_v24  ;;  %v5041_v17 = vld [vmem:[%s6552_s1 + $0x180] sm:$0xff]   ;;  %v5045_v22 = vld [vmem:[%s6552_s1 + $0x2b8] sm:$0xff]   ;;  %v5046_v24 = vld [vmem:[%s6552_s1 + $0x270] sm:$0xff]  }
  0x19   :  { %4492 = vmatpush3.bf16.msra.mxu1 %v5000_v23  ;;  %v773_v23 = vcombine.high %v757_v18, %v757_v18  ;;  %v5054_v32 = vld [vmem:[%s6552_s1 + $0x260] sm:$0xff]   ;;  %v5058_v36 = vld [vmem:[%s6552_s1 + $0x258] sm:$0xff]   ;;  %v5064_v43 = vld [vmem:[%s6552_s1 + $0x2d0] sm:$0xff]  }
  0x1a   :  { %4493 = vmatprep.subr.bf16.mxu1 %v5003_v26  ;;  %v5048_v26 = vld [vmem:[%s6552_s1 + $0x2f0] sm:$0xff]   ;;  %v5055_v33 = vld [vmem:[%s6552_s1 + $0x220] sm:$0xff]   ;;  %v5060_v38 = vld [vmem:[%s6552_s1 + $0x2d8] sm:$0xff]  }
  0x1b   :  { %4472 = vmatpush3.bf16.msra.mxu0 %v5002_v25  ;;  %v5047_v25 = vld [vmem:[%s6552_s1 + $0x230] sm:$0xff]   ;;  %v5057_v35 = vld [vmem:[%s6552_s1 + $0x2a0] sm:$0xff]   ;;  %v5061_v39 = vld [vmem:[%s6552_s1 + $0x298] sm:$0xff]  }
  0x1c   :  { %4473 = vmatprep.subr.bf16.mxu0 %v5005_v29  ;;  %v5051_v29 = vld [vmem:[%s6552_s1 + $0x228] sm:$0xff]   ;;  %v5065_v44 = vld [vmem:[%s6552_s1 + $0x290] sm:$0xff]  }
  0x1d   :  { %4494 = vmatpush3.bf16.msra.mxu1 %v5004_v28  ;;  %v5050_v28 = vld [vmem:[%s6552_s1 + $0x268] sm:$0xff]  }
  0x1e   :  { %4495 = vmatprep.subr.bf16.mxu1 %v5007_v31  ;;  %v5053_v31 = vld [vmem:[%s6552_s1 + $0x2a8] sm:$0xff]  }
  0x1f   :  { %4474 = vmatpush3.bf16.msra.mxu0 %v5006_v30  ;;  %v5052_v30 = vld [vmem:[%s6552_s1 + $0x2e8] sm:$0xff]  }
  0x20   :  { %4503 = vmatprep.subr.bf16.mxu0 %v5010_v37  ;;  %v5059_v37 = vld [vmem:[%s6552_s1 + $0x218] sm:$0xff]   ;;  %v23_v46 = vld [vmem:[%s6551_s0 + $0x8] sm:$0xff] }
  0x21   :  { %4496 = vmatpush3.bf16.msra.mxu1 %v5009_v34  ;;  %v5056_v34 = vld [vmem:[%s6552_s1 + $0x2e0] sm:$0xff]   ;;  %v783_v48 = vrot.slane %v23_v46, %v5493_v41 }
  0x22   :  { %4525 = vmatprep.subr.bf16.mxu1 %v5012_v40  ;;  %3132 = vmatmul.mubr.bf16.vlgmr.msra.gmra.mxu0 %v750_v45  ;;  %v5062_v40 = vld [vmem:[%s6552_s1 + $0x250] sm:$0xff]   ;;  %v5066_v45 = vld [vmem:[%s6552_s1 + $0x248] sm:$0xff]  }
  0x23   :  { %4504 = vmatpush3.bf16.msra.mxu0 %v5011_v47  ;;  %3211 = vmatprep.mubr.bf16.mxu0 %v771_v50  ;;  %v5067_v47 = vld [vmem:[%s6552_s1 + $0x208] sm:$0xff]  }
  0x24   :  { %3172 = vmatmul.mubr.bf16.vlgmr.msra.gmra.mxu1 %v772_v51  ;;  %4505 = vmatprep.subr.bf16.mxu0 %v5014_v52  ;;  %v5068_v50 = vld [vmem:[%s6552_s1 + $0x2c8] sm:$0xff]   ;;  %v791_v52 = vcombine.high %v783_v48, %v783_v48 }
  0x25   :  { %4526 = vmatpush3.bf16.msra.mxu1 %v5013_v49  ;;  %3251 = vmatprep.mubr.bf16.mxu1 %v775_v56  ;;  %v776_v49 = vcombine.high %v23_v46, %v23_v46  ;;  %v5069_v51 = vld [vmem:[%s6552_s1 + $0x288] sm:$0xff]  }
  0x26   :  { %4527 = vmatprep.subr.bf16.mxu1 %v5016_v55  ;;  %v5071_v55 = vld [vmem:[%s6552_s1 + $0x200] sm:$0xff]   ;;  %v813_v56 = vrot.slane %v791_v52, %v5493_v41  ;;  %v5117_v46 = vld [vmem:[%s6552_s1 + $0x4e8] sm:$0xff]   ;;  %v5123_v52 = vld [vmem:[%s6552_s1 + $0x458] sm:$0xff]  }
  0x27   :  { %4506 = vmatpush3.bf16.msra.mxu0 %v5015_v54  ;;  %v5685_v53 = vrot.slane %v776_v49, %v5493_v41  ;;  %v5070_v54 = vld [vmem:[%s6552_s1 + $0x240] sm:$0xff]  }
  0x28   :  { %4507 = vmatprep.subr.bf16.mxu0 %v5018_v58  ;;  %v5072_v58 = vld [vmem:[%s6552_s1 + $0x2c0] sm:$0xff]  }
  0x29   :  { %4528 = vmatpush3.bf16.msra.mxu1 %v5017_v57  ;;  %v792_v57 = vcombine.high %v5685_v53, %v5685_v53  ;;  %v5120_v49 = vld [vmem:[%s6552_s1 + $0x420] sm:$0xff]  }
  0x2a   :  { %4529 = vmatprep.subr.bf16.mxu1 %v5020_v60  ;;  %v823_v60 = vcombine.high %v813_v56, %v813_v56 }
  0x2b   :  { %4508 = vmatpush3.bf16.msra.mxu0 %v5019_v59  ;;  %v5073_v59 = vld [vmem:[%s6552_s1 + $0x280] sm:$0xff]  }
  0x2c   :  { %4509 = vmatprep.subr.bf16.mxu0 %v5022_v62  ;;  %v5074_v62 = vld [vmem:[%s6552_s1 + $0x378] sm:$0xff]  }
  0x2d   :  { %4530 = vmatpush3.bf16.msra.mxu1 %v5021_v61  ;;  %v799_v61 = vrot.slane %v783_v48, %v5493_v41  ;;  %v5119_v48 = vld [vmem:[%s6552_s1 + $0x460] sm:$0xff]  }
  0x2e   :  { %4531 = vmatprep.subr.bf16.mxu1 %v5024_v0  ;;  %v820_v0 = vrot.slane %v792_v57, %v5493_v41  ;;  %v5128_v57 = vld [vmem:[%s6552_s1 + $0x410] sm:$0xff]  }
  0x2f   :  { %4510 = vmatpush3.bf16.msra.mxu0 %v5023_v63  ;;  %v5075_v63 = vld [vmem:[%s6552_s1 + $0x338] sm:$0xff]  }
  0x30   :  { %4511 = vmatprep.subr.bf16.mxu0 %v5026_v2  ;;  %v5077_v2 = vld [vmem:[%s6552_s1 + $0x3b8] sm:$0xff]  }
  0x31   :  { %4532 = vmatpush3.bf16.msra.mxu1 %v5025_v1  ;;  %v5076_v1 = vld [vmem:[%s6552_s1 + $0x3f8] sm:$0xff]  }
  0x32   :  { %4533 = vmatprep.subr.bf16.mxu1 %v5028_v4  ;;  %v5078_v4 = vld [vmem:[%s6552_s1 + $0x370] sm:$0xff]  }
  0x33   :  { %4512 = vmatpush3.bf16.msra.mxu0 %v5027_v3  ;;  %v821_v3 = vcombine.high %v799_v61, %v799_v61 }
  0x34   :  { %4513 = vmatprep.subr.bf16.mxu0 %v5030_v6  ;;  %v824_v6 = vcombine.high %v820_v0, %v820_v0 }
  0x35   :  { %4534 = vmatpush3.bf16.msra.mxu1 %v5029_v5  ;;  %v5079_v5 = vld [vmem:[%s6552_s1 + $0x330] sm:$0xff]  }
  0x36   :  { %4535 = vmatprep.subr.bf16.mxu1 %v5032_v8  ;;  %v5081_v8 = vld [vmem:[%s6552_s1 + $0x3b0] sm:$0xff]  }
  0x37   :  { %4514 = vmatpush3.bf16.msra.mxu0 %v5031_v7  ;;  %v5080_v7 = vld [vmem:[%s6552_s1 + $0x3f0] sm:$0xff]  }
  0x38   :  { %4515 = vmatprep.subr.bf16.mxu0 %v5034_v10  ;;  %v5083_v10 = vld [vmem:[%s6552_s1 + $0x328] sm:$0xff]  }
  0x39   :  { %4536 = vmatpush3.bf16.msra.mxu1 %v5033_v9  ;;  %v5082_v9 = vld [vmem:[%s6552_s1 + $0x368] sm:$0xff]  }
  0x3a   :  { %4537 = vmatprep.subr.bf16.mxu1 %v5036_v12  ;;  %v5085_v12 = vld [vmem:[%s6552_s1 + $0x3a8] sm:$0xff]  }
  0x3b   :  { %4516 = vmatpush3.bf16.msra.mxu0 %v5035_v11  ;;  %v5084_v11 = vld [vmem:[%s6552_s1 + $0x3e8] sm:$0xff]  }
  0x3c   :  { %4517 = vmatprep.subr.bf16.mxu0 %v5038_v14  ;;  %v5087_v14 = vld [vmem:[%s6552_s1 + $0x320] sm:$0xff]  }
  0x3d   :  { %4538 = vmatpush3.bf16.msra.mxu1 %v5037_v13  ;;  %v5086_v13 = vld [vmem:[%s6552_s1 + $0x360] sm:$0xff]  }
  0x3e   :  { %4539 = vmatprep.subr.bf16.mxu1 %v5040_v16  ;;  %v5089_v16 = vld [vmem:[%s6552_s1 + $0x3a0] sm:$0xff]  }
  0x3f   :  { %4518 = vmatpush3.bf16.msra.mxu0 %v5039_v15  ;;  %v5088_v15 = vld [vmem:[%s6552_s1 + $0x3e0] sm:$0xff]  }
  0x40   :  { %4547 = vmatprep.subr.bf16.mxu0 %v5042_v19  ;;  %v5092_v19 = vld [vmem:[%s6552_s1 + $0x3d8] sm:$0xff]  }
  0x41   :  { %4540 = vmatpush3.bf16.msra.mxu1 %v5041_v17  ;;  %v5090_v17 = vld [vmem:[%s6552_s1 + $0x358] sm:$0xff]  }
  0x42   :  { %3212 = vmatmul.mubr.bf16.vlgmr.msra.gmra.mxu0 %v757_v18  ;;  %4569 = vmatprep.subr.bf16.mxu1 %v5044_v21  ;;  %v5091_v18 = vld [vmem:[%s6552_s1 + $0x318] sm:$0xff]   ;;  %v5094_v21 = vld [vmem:[%s6552_s1 + $0x350] sm:$0xff]  }
  0x43   :  { %4548 = vmatpush3.bf16.msra.mxu0 %v5043_v20  ;;  %3291 = vmatprep.mubr.bf16.mxu0 %v813_v56  ;;  %v5093_v20 = vld [vmem:[%s6552_s1 + $0x398] sm:$0xff]   ;;  %v5127_v56 = vld [vmem:[%s6552_s1 + $0x450] sm:$0xff]  }
  0x44   :  { %3252 = vmatmul.mubr.bf16.vlgmr.msra.gmra.mxu1 %v773_v23  ;;  %4549 = vmatprep.subr.bf16.mxu0 %v5046_v24  ;;  %v5096_v23 = vld [vmem:[%s6552_s1 + $0x3d0] sm:$0xff]  }
  0x45   :  { %4570 = vmatpush3.bf16.msra.mxu1 %v5045_v22  ;;  %3331 = vmatprep.mubr.bf16.mxu1 %v823_v60  ;;  %v5095_v22 = vld [vmem:[%s6552_s1 + $0x310] sm:$0xff]   ;;  %v5131_v60 = vld [vmem:[%s6552_s1 + $0x448] sm:$0xff]  }
  0x46   :  { %4571 = vmatprep.subr.bf16.mxu1 %v5048_v26  ;;  %v5097_v24 = vld [vmem:[%s6552_s1 + $0x390] sm:$0xff]   ;;  %v5099_v26 = vld [vmem:[%s6552_s1 + $0x308] sm:$0xff]  }
  0x47   :  { %4550 = vmatpush3.bf16.msra.mxu0 %v5047_v25  ;;  %v5098_v25 = vld [vmem:[%s6552_s1 + $0x348] sm:$0xff]  }
  0x48   :  { %4551 = vmatprep.subr.bf16.mxu0 %v5050_v28  ;;  %v5101_v28 = vld [vmem:[%s6552_s1 + $0x388] sm:$0xff]  }
  0x49   :  { %4572 = vmatpush3.bf16.msra.mxu1 %v5049_v27  ;;  %v5100_v27 = vld [vmem:[%s6552_s1 + $0x3c8] sm:$0xff]  }
  0x4a   :  { %4573 = vmatprep.subr.bf16.mxu1 %v5052_v30  ;;  %v5103_v30 = vld [vmem:[%s6552_s1 + $0x300] sm:$0xff]  }
  0x4b   :  { %4552 = vmatpush3.bf16.msra.mxu0 %v5051_v29  ;;  %v5102_v29 = vld [vmem:[%s6552_s1 + $0x340] sm:$0xff]  }
  0x4c   :  { %4553 = vmatprep.subr.bf16.mxu0 %v5054_v32  ;;  %v5106_v32 = vld [vmem:[%s6552_s1 + $0x380] sm:$0xff]  }
  0x4d   :  { %4574 = vmatpush3.bf16.msra.mxu1 %v5053_v31  ;;  %v5104_v31 = vld [vmem:[%s6552_s1 + $0x3c0] sm:$0xff]  }
  0x4e   :  { %4575 = vmatprep.subr.bf16.mxu1 %v5056_v34  ;;  %v5107_v34 = vld [vmem:[%s6552_s1 + $0x478] sm:$0xff]  }
  0x4f   :  { %4554 = vmatpush3.bf16.msra.mxu0 %v5055_v33  ;;  %v806_v33 = vrot.slane %v5685_v53, %v5493_v41  ;;  %v5124_v53 = vld [vmem:[%s6552_s1 + $0x418] sm:$0xff]  }
  0x50   :  { %4555 = vmatprep.subr.bf16.mxu0 %v5058_v36  ;;  %v5109_v36 = vld [vmem:[%s6552_s1 + $0x4f8] sm:$0xff]  }
  0x51   :  { %4576 = vmatpush3.bf16.msra.mxu1 %v5057_v35  ;;  %v5108_v35 = vld [vmem:[%s6552_s1 + $0x438] sm:$0xff]  }
  0x52   :  { %4577 = vmatprep.subr.bf16.mxu1 %v5060_v38  ;;  %v822_v38 = vcombine.high %v806_v33, %v806_v33 }
  0x53   :  { %4556 = vmatpush3.bf16.msra.mxu0 %v5059_v37  ;;  %v5110_v37 = vld [vmem:[%s6552_s1 + $0x4b8] sm:$0xff]  }
  0x54   :  { %4557 = vmatprep.subr.bf16.mxu0 %v5062_v40  ;;  %v5112_v40 = vld [vmem:[%s6552_s1 + $0x430] sm:$0xff]  }
  0x55   :  { %4578 = vmatpush3.bf16.msra.mxu1 %v5061_v39  ;;  %v5111_v39 = vld [vmem:[%s6552_s1 + $0x470] sm:$0xff]  }
  0x56   :  { %4579 = vmatprep.subr.bf16.mxu1 %v5064_v43  ;;  %v5114_v43 = vld [vmem:[%s6552_s1 + $0x4b0] sm:$0xff]  }
  0x57   :  { %4558 = vmatpush3.bf16.msra.mxu0 %v5063_v42  ;;  %v5113_v42 = vld [vmem:[%s6552_s1 + $0x4f0] sm:$0xff]  }
  0x58   :  { %4559 = vmatprep.subr.bf16.mxu0 %v5066_v45  ;;  %v5116_v45 = vld [vmem:[%s6552_s1 + $0x428] sm:$0xff]  }
  0x59   :  { %4580 = vmatpush3.bf16.msra.mxu1 %v5065_v44  ;;  %v5115_v44 = vld [vmem:[%s6552_s1 + $0x468] sm:$0xff]  }
  0x5a   :  { %4581 = vmatprep.subr.bf16.mxu1 %v5068_v50  ;;  %v5121_v50 = vld [vmem:[%s6552_s1 + $0x4e0] sm:$0xff]  }
  0x5b   :  { %4560 = vmatpush3.bf16.msra.mxu0 %v5067_v47  ;;  %v5118_v47 = vld [vmem:[%s6552_s1 + $0x4a8] sm:$0xff]  }
  0x5c   :  { %4561 = vmatprep.subr.bf16.mxu0 %v5070_v54  ;;  %v5125_v54 = vld [vmem:[%s6552_s1 + $0x4d8] sm:$0xff]  }
  0x5d   :  { %4582 = vmatpush3.bf16.msra.mxu1 %v5069_v51  ;;  %v5122_v51 = vld [vmem:[%s6552_s1 + $0x4a0] sm:$0xff]  }
  0x5e   :  { %4583 = vmatprep.subr.bf16.mxu1 %v5072_v58  ;;  %v5129_v58 = vld [vmem:[%s6552_s1 + $0x4d0] sm:$0xff]  }
  0x5f   :  { %4562 = vmatpush3.bf16.msra.mxu0 %v5071_v55  ;;  %v5126_v55 = vld [vmem:[%s6552_s1 + $0x498] sm:$0xff]  }
  0x60   :  { %4591 = vmatprep.subr.bf16.mxu0 %v5074_v62  ;;  %v5132_v62 = vld [vmem:[%s6552_s1 + $0x408] sm:$0xff]  }
  0x61   :  { %4584 = vmatpush3.bf16.msra.mxu1 %v5073_v59  ;;  %v5130_v59 = vld [vmem:[%s6552_s1 + $0x490] sm:$0xff]  }
  0x62   :  { %3292 = vmatmul.mubr.bf16.vlgmr.msra.gmra.mxu0 %v799_v61  ;;  %4613 = vmatprep.subr.bf16.mxu1 %v5076_v1  ;;  %v24_v61 = vld [vmem:[%s6551_s0 + $0x10] sm:$0xff]  ;;  %v5133_v1 = vld [vmem:[%s6552_s1 + $0x4c8] sm:$0xff]  }
  0x63   :  { %4592 = vmatpush3.bf16.msra.mxu0 %v5075_v63  ;;  %3371 = vmatprep.mubr.bf16.mxu0 %v820_v0  ;;  %v832_v63 = vrot.slane %v24_v61, %v5493_v41  ;;  %v825_v0 = vcombine.high %v24_v61, %v24_v61  ;;  %v5182_v61 = vld [vmem:[%s6552_s1 + $0x6e8] sm:$0xff]  }
  0x64   :  { %3332 = vmatmul.mubr.bf16.vlgmr.msra.gmra.mxu1 %v821_v3  ;;  %4593 = vmatprep.subr.bf16.mxu0 %v5078_v4 }
  0x65   :  { %4614 = vmatpush3.bf16.msra.mxu1 %v5077_v2  ;;  %3411 = vmatprep.mubr.bf16.mxu1 %v824_v6  ;;  %v5134_v2 = vld [vmem:[%s6552_s1 + $0x488] sm:$0xff]   ;;  %v840_v3 = vcombine.high %v832_v63, %v832_v63  ;;  %v5891_v4 = vrot.slane %v825_v0, %v5493_v41  ;;  %v5136_v6 = vld [vmem:[%s6552_s1 + $0x400] sm:$0xff]  }
  0x66   :  { %4615 = vmatprep.subr.bf16.mxu1 %v5080_v7  ;;  %v5185_v0 = vld [vmem:[%s6552_s1 + $0x620] sm:$0xff]  }
  0x67   :  { %4594 = vmatpush3.bf16.msra.mxu0 %v5079_v5  ;;  %v5135_v5 = vld [vmem:[%s6552_s1 + $0x440] sm:$0xff]   ;;  %v862_v7 = vrot.slane %v840_v3, %v5493_v41  ;;  %v5188_v3 = vld [vmem:[%s6552_s1 + $0x658] sm:$0xff]  }
  0x68   :  { %4595 = vmatprep.subr.bf16.mxu0 %v5082_v9  ;;  %v5137_v9 = vld [vmem:[%s6552_s1 + $0x4c0] sm:$0xff]  }
  0x69   :  { %4616 = vmatpush3.bf16.msra.mxu1 %v5081_v8  ;;  %v841_v8 = vcombine.high %v5891_v4, %v5891_v4 }
  0x6a   :  { %4617 = vmatprep.subr.bf16.mxu1 %v5084_v11  ;;  %v872_v11 = vcombine.high %v862_v7, %v862_v7 }
  0x6b   :  { %4596 = vmatpush3.bf16.msra.mxu0 %v5083_v10  ;;  %v5138_v10 = vld [vmem:[%s6552_s1 + $0x480] sm:$0xff]  }
  0x6c   :  { %4597 = vmatprep.subr.bf16.mxu0 %v5086_v13  ;;  %v5139_v13 = vld [vmem:[%s6552_s1 + $0x578] sm:$0xff]  }
  0x6d   :  { %4618 = vmatpush3.bf16.msra.mxu1 %v5085_v12  ;;  %v848_v12 = vrot.slane %v832_v63, %v5493_v41  ;;  %v5184_v63 = vld [vmem:[%s6552_s1 + $0x660] sm:$0xff]  }
  0x6e   :  { %4619 = vmatprep.subr.bf16.mxu1 %v5088_v15  ;;  %v869_v15 = vrot.slane %v841_v8, %v5493_v41  ;;  %v5193_v8 = vld [vmem:[%s6552_s1 + $0x610] sm:$0xff]  }
  0x6f   :  { %4598 = vmatpush3.bf16.msra.mxu0 %v5087_v14  ;;  %v5140_v14 = vld [vmem:[%s6552_s1 + $0x538] sm:$0xff]  }
  0x70   :  { %4599 = vmatprep.subr.bf16.mxu0 %v5090_v17  ;;  %v5142_v17 = vld [vmem:[%s6552_s1 + $0x5b8] sm:$0xff]  }
  0x71   :  { %4620 = vmatpush3.bf16.msra.mxu1 %v5089_v16  ;;  %v5141_v16 = vld [vmem:[%s6552_s1 + $0x5f8] sm:$0xff]  }
  0x72   :  { %4621 = vmatprep.subr.bf16.mxu1 %v5092_v19  ;;  %v5143_v19 = vld [vmem:[%s6552_s1 + $0x570] sm:$0xff]  }
  0x73   :  { %4600 = vmatpush3.bf16.msra.mxu0 %v5091_v18  ;;  %v870_v18 = vcombine.high %v848_v12, %v848_v12 }
  0x74   :  { %4601 = vmatprep.subr.bf16.mxu0 %v5094_v21  ;;  %v873_v21 = vcombine.high %v869_v15, %v869_v15 }
  0x75   :  { %4622 = vmatpush3.bf16.msra.mxu1 %v5093_v20  ;;  %v5144_v20 = vld [vmem:[%s6552_s1 + $0x530] sm:$0xff]  }
  0x76   :  { %4623 = vmatprep.subr.bf16.mxu1 %v5096_v23  ;;  %v5146_v23 = vld [vmem:[%s6552_s1 + $0x5b0] sm:$0xff]  }
  0x77   :  { %4602 = vmatpush3.bf16.msra.mxu0 %v5095_v22  ;;  %v5145_v22 = vld [vmem:[%s6552_s1 + $0x5f0] sm:$0xff]  }
  0x78   :  { %4603 = vmatprep.subr.bf16.mxu0 %v5098_v25  ;;  %v5148_v25 = vld [vmem:[%s6552_s1 + $0x528] sm:$0xff]  }
  0x79   :  { %4624 = vmatpush3.bf16.msra.mxu1 %v5097_v24  ;;  %v5147_v24 = vld [vmem:[%s6552_s1 + $0x568] sm:$0xff]  }
  0x7a   :  { %4625 = vmatprep.subr.bf16.mxu1 %v5100_v27  ;;  %v5150_v27 = vld [vmem:[%s6552_s1 + $0x5a8] sm:$0xff]  }
  0x7b   :  { %4604 = vmatpush3.bf16.msra.mxu0 %v5099_v26  ;;  %v5149_v26 = vld [vmem:[%s6552_s1 + $0x5e8] sm:$0xff]  }
  0x7c   :  { %4605 = vmatprep.subr.bf16.mxu0 %v5102_v29  ;;  %v5152_v29 = vld [vmem:[%s6552_s1 + $0x520] sm:$0xff]  }
  0x7d   :  { %4626 = vmatpush3.bf16.msra.mxu1 %v5101_v28  ;;  %v5151_v28 = vld [vmem:[%s6552_s1 + $0x560] sm:$0xff]  }
  0x7e   :  { %4627 = vmatprep.subr.bf16.mxu1 %v5104_v31  ;;  %v5154_v31 = vld [vmem:[%s6552_s1 + $0x5a0] sm:$0xff]  }
  0x7f   :  { %4606 = vmatpush3.bf16.msra.mxu0 %v5103_v30  ;;  %v5153_v30 = vld [vmem:[%s6552_s1 + $0x5e0] sm:$0xff]  }
  0x80   :  { %4635 = vmatprep.subr.bf16.mxu0 %v5107_v34  ;;  %v5157_v34 = vld [vmem:[%s6552_s1 + $0x5d8] sm:$0xff]  }
  0x81   :  { %4628 = vmatpush3.bf16.msra.mxu1 %v5106_v32  ;;  %v5155_v32 = vld [vmem:[%s6552_s1 + $0x558] sm:$0xff]  }
  0x82   :  { %3372 = vmatmul.mubr.bf16.vlgmr.msra.gmra.mxu0 %v806_v33  ;;  %4657 = vmatprep.subr.bf16.mxu1 %v5109_v36  ;;  %v5156_v33 = vld [vmem:[%s6552_s1 + $0x518] sm:$0xff]   ;;  %v5159_v36 = vld [vmem:[%s6552_s1 + $0x550] sm:$0xff]  }
  0x83   :  { %4636 = vmatpush3.bf16.msra.mxu0 %v5108_v35  ;;  %3451 = vmatprep.mubr.bf16.mxu0 %v862_v7  ;;  %v5158_v35 = vld [vmem:[%s6552_s1 + $0x598] sm:$0xff]   ;;  %v5192_v7 = vld [vmem:[%s6552_s1 + $0x650] sm:$0xff]  }
  0x84   :  { %3412 = vmatmul.mubr.bf16.vlgmr.msra.gmra.mxu1 %v822_v38  ;;  %4637 = vmatprep.subr.bf16.mxu0 %v5111_v39  ;;  %v5161_v38 = vld [vmem:[%s6552_s1 + $0x5d0] sm:$0xff]  }
  0x85   :  { %4658 = vmatpush3.bf16.msra.mxu1 %v5110_v37  ;;  %3491 = vmatprep.mubr.bf16.mxu1 %v872_v11  ;;  %v5160_v37 = vld [vmem:[%s6552_s1 + $0x510] sm:$0xff]   ;;  %v5196_v11 = vld [vmem:[%s6552_s1 + $0x648] sm:$0xff]  }
  0x86   :  { %4659 = vmatprep.subr.bf16.mxu1 %v5113_v42  ;;  %v5162_v39 = vld [vmem:[%s6552_s1 + $0x590] sm:$0xff]   ;;  %v5164_v42 = vld [vmem:[%s6552_s1 + $0x508] sm:$0xff]  }
  0x87   :  { %4638 = vmatpush3.bf16.msra.mxu0 %v5112_v40  ;;  %v5163_v40 = vld [vmem:[%s6552_s1 + $0x548] sm:$0xff]  }
  0x88   :  { %4639 = vmatprep.subr.bf16.mxu0 %v5115_v44  ;;  %v5166_v44 = vld [vmem:[%s6552_s1 + $0x588] sm:$0xff]  }
  0x89   :  { %4660 = vmatpush3.bf16.msra.mxu1 %v5114_v43  ;;  %v5165_v43 = vld [vmem:[%s6552_s1 + $0x5c8] sm:$0xff]  }
  0x8a   :  { %4661 = vmatprep.subr.bf16.mxu1 %v5117_v46  ;;  %v5168_v46 = vld [vmem:[%s6552_s1 + $0x500] sm:$0xff]  }
  0x8b   :  { %4640 = vmatpush3.bf16.msra.mxu0 %v5116_v45  ;;  %v5167_v45 = vld [vmem:[%s6552_s1 + $0x540] sm:$0xff]  }
  0x8c   :  { %4641 = vmatprep.subr.bf16.mxu0 %v5119_v48  ;;  %v5171_v48 = vld [vmem:[%s6552_s1 + $0x580] sm:$0xff]  }
  0x8d   :  { %4662 = vmatpush3.bf16.msra.mxu1 %v5118_v47  ;;  %v5169_v47 = vld [vmem:[%s6552_s1 + $0x5c0] sm:$0xff]  }
  0x8e   :  { %4663 = vmatprep.subr.bf16.mxu1 %v5121_v50  ;;  %v5172_v50 = vld [vmem:[%s6552_s1 + $0x678] sm:$0xff]  }
  0x8f   :  { %4642 = vmatpush3.bf16.msra.mxu0 %v5120_v49  ;;  %v855_v49 = vrot.slane %v5891_v4, %v5493_v41  ;;  %v5189_v4 = vld [vmem:[%s6552_s1 + $0x618] sm:$0xff]  }
  0x90   :  { %4643 = vmatprep.subr.bf16.mxu0 %v5123_v52  ;;  %v5174_v52 = vld [vmem:[%s6552_s1 + $0x6f8] sm:$0xff]  }
  0x91   :  { %4664 = vmatpush3.bf16.msra.mxu1 %v5122_v51  ;;  %v5173_v51 = vld [vmem:[%s6552_s1 + $0x638] sm:$0xff]  }
  0x92   :  { %4665 = vmatprep.subr.bf16.mxu1 %v5125_v54  ;;  %v871_v54 = vcombine.high %v855_v49, %v855_v49 }
  0x93   :  { %4644 = vmatpush3.bf16.msra.mxu0 %v5124_v53  ;;  %v5175_v53 = vld [vmem:[%s6552_s1 + $0x6b8] sm:$0xff]  }
  0x94   :  { %4645 = vmatprep.subr.bf16.mxu0 %v5127_v56  ;;  %v5177_v56 = vld [vmem:[%s6552_s1 + $0x630] sm:$0xff]  }
  0x95   :  { %4666 = vmatpush3.bf16.msra.mxu1 %v5126_v55  ;;  %v5176_v55 = vld [vmem:[%s6552_s1 + $0x670] sm:$0xff]  }
  0x96   :  { %4667 = vmatprep.subr.bf16.mxu1 %v5129_v58  ;;  %v5179_v58 = vld [vmem:[%s6552_s1 + $0x6b0] sm:$0xff]  }
  0x97   :  { %4646 = vmatpush3.bf16.msra.mxu0 %v5128_v57  ;;  %v5178_v57 = vld [vmem:[%s6552_s1 + $0x6f0] sm:$0xff]  }
  0x98   :  { %4647 = vmatprep.subr.bf16.mxu0 %v5131_v60  ;;  %v5181_v60 = vld [vmem:[%s6552_s1 + $0x628] sm:$0xff]  }
  0x99   :  { %4668 = vmatpush3.bf16.msra.mxu1 %v5130_v59  ;;  %v5180_v59 = vld [vmem:[%s6552_s1 + $0x668] sm:$0xff]  }
  0x9a   :  { %4669 = vmatprep.subr.bf16.mxu1 %v5133_v1  ;;  %v5186_v1 = vld [vmem:[%s6552_s1 + $0x6e0] sm:$0xff]  }
  0x9b   :  { %4648 = vmatpush3.bf16.msra.mxu0 %v5132_v62  ;;  %v5183_v62 = vld [vmem:[%s6552_s1 + $0x6a8] sm:$0xff]  }
  0x9c   :  { %4649 = vmatprep.subr.bf16.mxu0 %v5135_v5  ;;  %v5190_v5 = vld [vmem:[%s6552_s1 + $0x6d8] sm:$0xff]  }
  0x9d   :  { %4670 = vmatpush3.bf16.msra.mxu1 %v5134_v2  ;;  %v5187_v2 = vld [vmem:[%s6552_s1 + $0x6a0] sm:$0xff]  }
  0x9e   :  { %4671 = vmatprep.subr.bf16.mxu1 %v5137_v9  ;;  %v5194_v9 = vld [vmem:[%s6552_s1 + $0x6d0] sm:$0xff]  }
  0x9f   :  { %4650 = vmatpush3.bf16.msra.mxu0 %v5136_v6  ;;  %v5191_v6 = vld [vmem:[%s6552_s1 + $0x698] sm:$0xff]  }
  0xa0   :  { %4679 = vmatprep.subr.bf16.mxu0 %v5139_v13  ;;  %v5198_v13 = vld [vmem:[%s6552_s1 + $0x6c8] sm:$0xff]  }
  0xa1   :  { %4672 = vmatpush3.bf16.msra.mxu1 %v5138_v10  ;;  %v5195_v10 = vld [vmem:[%s6552_s1 + $0x690] sm:$0xff]  }
  0xa2   :  { %3452 = vmatmul.mubr.bf16.vlgmr.msra.gmra.mxu0 %v848_v12  ;;  %4701 = vmatprep.subr.bf16.mxu1 %v5141_v16  ;;  %v25_v12 = vld [vmem:[%s6551_s0 + $0x18] sm:$0xff]  ;;  %v5197_v16 = vld [vmem:[%s6552_s1 + $0x608] sm:$0xff]  }
  0xa3   :  { %4680 = vmatpush3.bf16.msra.mxu0 %v5140_v14  ;;  %3531 = vmatprep.mubr.bf16.mxu0 %v869_v15  ;;  %v881_v14 = vrot.slane %v25_v12, %v5493_v41  ;;  %v874_v15 = vcombine.high %v25_v12, %v25_v12 }
  0xa4   :  { %3492 = vmatmul.mubr.bf16.vlgmr.msra.gmra.mxu1 %v870_v18  ;;  %4681 = vmatprep.subr.bf16.mxu0 %v5143_v19 }
  0xa5   :  { %4702 = vmatpush3.bf16.msra.mxu1 %v5142_v17  ;;  %3571 = vmatprep.mubr.bf16.mxu1 %v873_v21  ;;  %v5200_v17 = vld [vmem:[%s6552_s1 + $0x640] sm:$0xff]   ;;  %v889_v18 = vcombine.high %v881_v14, %v881_v14  ;;  %v6097_v19 = vrot.slane %v874_v15, %v5493_v41  ;;  %v5239_v15 = vld [vmem:[%s6552_s1 + $0x8f8] sm:$0xff]  }
  0xa6   :  { %4703 = vmatprep.subr.bf16.mxu1 %v5145_v22  ;;  %v5202_v21 = vld [vmem:[%s6552_s1 + $0x6c0] sm:$0xff]  }
  0xa7   :  { %4682 = vmatpush3.bf16.msra.mxu0 %v5144_v20  ;;  %v5199_v20 = vld [vmem:[%s6552_s1 + $0x688] sm:$0xff]   ;;  %v911_v22 = vrot.slane %v889_v18, %v5493_v41  ;;  %v904_v12 = vrot.slane %v6097_v19, %v5493_v41  ;;  %v5241_v18 = vld [vmem:[%s6552_s1 + $0x870] sm:$0xff]  }
  0xa8   :  { %4683 = vmatprep.subr.bf16.mxu0 %v5147_v24  ;;  %v5201_v24 = vld [vmem:[%s6552_s1 + $0x600] sm:$0xff]  }
  0xa9   :  { %4704 = vmatpush3.bf16.msra.mxu1 %v5146_v23  ;;  %v890_v23 = vcombine.high %v6097_v19, %v6097_v19  ;;  %v5240_v19 = vld [vmem:[%s6552_s1 + $0x8b8] sm:$0xff]  }
  0xaa   :  { %4705 = vmatprep.subr.bf16.mxu1 %v5149_v26  ;;  %v5204_v26 = vld [vmem:[%s6552_s1 + $0x778] sm:$0xff]  }
  0xab   :  { %4684 = vmatpush3.bf16.msra.mxu0 %v5148_v25  ;;  %v897_v25 = vrot.slane %v881_v14, %v5493_v41  ;;  %v5236_v14 = vld [vmem:[%s6552_s1 + $0x780] sm:$0xff]  }
  0xac   :  { %4685 = vmatprep.subr.bf16.mxu0 %v5151_v28  ;;  %v5203_v28 = vld [vmem:[%s6552_s1 + $0x680] sm:$0xff]  }
  0xad   :  { %4706 = vmatpush3.bf16.msra.mxu1 %v5150_v27  ;;  %v921_v27 = vcombine.high %v911_v22, %v911_v22 }
  0xae   :  { %4707 = vmatprep.subr.bf16.mxu1 %v5153_v30  ;;  %v5206_v30 = vld [vmem:[%s6552_s1 + $0x7f8] sm:$0xff]  }
  0xaf   :  { %4686 = vmatpush3.bf16.msra.mxu0 %v5152_v29  ;;  %v918_v29 = vrot.slane %v890_v23, %v5493_v41 }
  0xb0   :  { %4687 = vmatprep.subr.bf16.mxu0 %v5155_v32  ;;  %v919_v32 = vcombine.high %v897_v25, %v897_v25 }
  0xb1   :  { %4708 = vmatpush3.bf16.msra.mxu1 %v5154_v31  ;;  %v5205_v31 = vld [vmem:[%s6552_s1 + $0x738] sm:$0xff]  }
  0xb2   :  { %4709 = vmatprep.subr.bf16.mxu1 %v5157_v34  ;;  %v5207_v34 = vld [vmem:[%s6552_s1 + $0x7b8] sm:$0xff]  }
  0xb3   :  { %4688 = vmatpush3.bf16.msra.mxu0 %v5156_v33  ;;  %v5208_v33 = vld [vmem:[%s6552_s1 + $0x770] sm:$0xff]  }
  0xb4   :  { %4689 = vmatprep.subr.bf16.mxu0 %v5159_v36 }
  0xb5   :  { %4710 = vmatpush3.bf16.msra.mxu1 %v5158_v35  ;;  %v922_v35 = vcombine.high %v918_v29, %v918_v29 }
  0xb6   :  { %4711 = vmatprep.subr.bf16.mxu1 %v5161_v38  ;;  %v5210_v38 = vld [vmem:[%s6552_s1 + $0x7f0] sm:$0xff]  }
  0xb7   :  { %4690 = vmatpush3.bf16.msra.mxu0 %v5160_v37  ;;  %v4104_v37 = vld [vmem:[%s6553_s2] ss:$0 sm:$0xff] }
  0xb8   :  { %4691 = vmatprep.subr.bf16.mxu0 %v5163_v40 }
  0xb9   :  { %4712 = vmatpush3.bf16.msra.mxu1 %v5162_v39  ;;  %v5209_v39 = vld [vmem:[%s6552_s1 + $0x730] sm:$0xff]  }
  0xba   :  { %4713 = vmatprep.subr.bf16.mxu1 %v5165_v43  ;;  %v5212_v43 = vld [vmem:[%s6552_s1 + $0x768] sm:$0xff]  }
  0xbb   :  { %4692 = vmatpush3.bf16.msra.mxu0 %v5164_v42 }
  0xbc   :  { %4693 = vmatprep.subr.bf16.mxu0 %v5167_v45  ;;  %v5211_v45 = vld [vmem:[%s6552_s1 + $0x7b0] sm:$0xff]  }
  0xbd   :  { %4714 = vmatpush3.bf16.msra.mxu1 %v5166_v44 }
  0xbe   :  { %4715 = vmatprep.subr.bf16.mxu1 %v5169_v47 }
  0xbf   :  { %4694 = vmatpush3.bf16.msra.mxu0 %v5168_v46 }
  0xc0   :  { %4723 = vmatprep.subr.bf16.mxu0 %v5172_v50 }
  0xc1   :  { %4716 = vmatpush3.bf16.msra.mxu1 %v5171_v48  ;;  %v5214_v48 = vld [vmem:[%s6552_s1 + $0x7e8] sm:$0xff]  }
  0xc2   :  { %3532 = vmatmul.mubr.bf16.vlgmr.msra.gmra.mxu0 %v855_v49  ;;  %4745 = vmatprep.subr.bf16.mxu1 %v5174_v52 }
  0xc3   :  { %4724 = vmatpush3.bf16.msra.mxu0 %v5173_v51  ;;  %3611 = vmatprep.mubr.bf16.mxu0 %v911_v22  ;;  %v5213_v51 = vld [vmem:[%s6552_s1 + $0x728] sm:$0xff]   ;;  %v5242_v22 = vld [vmem:[%s6552_s1 + $0x830] sm:$0xff]  }
  0xc4   :  { %3572 = vmatmul.mubr.bf16.vlgmr.msra.gmra.mxu1 %v871_v54  ;;  %4725 = vmatprep.subr.bf16.mxu0 %v5176_v55  ;;  %v5216_v54 = vld [vmem:[%s6552_s1 + $0x760] sm:$0xff]  }
  0xc5   :  { %4746 = vmatpush3.bf16.msra.mxu1 %v5175_v53  ;;  %3651 = vmatprep.mubr.bf16.mxu1 %v921_v27  ;;  %v5244_v27 = vld [vmem:[%s6552_s1 + $0x8b0] sm:$0xff]  }
  0xc6   :  { %4747 = vmatprep.subr.bf16.mxu1 %v5178_v57 }
  0xc7   :  { %4726 = vmatpush3.bf16.msra.mxu0 %v5177_v56  ;;  %v5215_v56 = vld [vmem:[%s6552_s1 + $0x7a8] sm:$0xff]  }
  0xc8   :  { %4727 = vmatprep.subr.bf16.mxu0 %v5180_v59  ;;  %v5217_v59 = vld [vmem:[%s6552_s1 + $0x720] sm:$0xff]  }
  0xc9   :  { %4748 = vmatpush3.bf16.msra.mxu1 %v5179_v58  ;;  %v5218_v58 = vld [vmem:[%s6552_s1 + $0x7e0] sm:$0xff]  }
  0xca   :  { %4749 = vmatprep.subr.bf16.mxu1 %v5182_v61  ;;  %v5219_v61 = vld [vmem:[%s6552_s1 + $0x7a0] sm:$0xff]  }
  0xcb   :  { %4728 = vmatpush3.bf16.msra.mxu0 %v5181_v60  ;;  %v5220_v60 = vld [vmem:[%s6552_s1 + $0x758] sm:$0xff]  }
  0xcc   :  { %4729 = vmatprep.subr.bf16.mxu0 %v5184_v63  ;;  %v5221_v63 = vld [vmem:[%s6552_s1 + $0x718] sm:$0xff]  }
  0xcd   :  { %4750 = vmatpush3.bf16.msra.mxu1 %v5183_v62  ;;  %v5222_v62 = vld [vmem:[%s6552_s1 + $0x7d8] sm:$0xff]  }
  0xce   :  { %4751 = vmatprep.subr.bf16.mxu1 %v5186_v1  ;;  %v5223_v1 = vld [vmem:[%s6552_s1 + $0x798] sm:$0xff]  }
  0xcf   :  { %4730 = vmatpush3.bf16.msra.mxu0 %v5185_v0  ;;  %v5224_v0 = vld [vmem:[%s6552_s1 + $0x750] sm:$0xff]  }
  0xd0   :  { %4731 = vmatprep.subr.bf16.mxu0 %v5188_v3  ;;  %v5225_v3 = vld [vmem:[%s6552_s1 + $0x710] sm:$0xff]  }
  0xd1   :  { %4752 = vmatpush3.bf16.msra.mxu1 %v5187_v2  ;;  %v5226_v2 = vld [vmem:[%s6552_s1 + $0x7d0] sm:$0xff]  }
  0xd2   :  { %4753 = vmatprep.subr.bf16.mxu1 %v5190_v5  ;;  %v5227_v5 = vld [vmem:[%s6552_s1 + $0x790] sm:$0xff]  }
  0xd3   :  { %4732 = vmatpush3.bf16.msra.mxu0 %v5189_v4  ;;  %v5228_v4 = vld [vmem:[%s6552_s1 + $0x748] sm:$0xff]  }
  0xd4   :  { %4733 = vmatprep.subr.bf16.mxu0 %v5192_v7  ;;  %v5229_v7 = vld [vmem:[%s6552_s1 + $0x708] sm:$0xff]  }
  0xd5   :  { %4754 = vmatpush3.bf16.msra.mxu1 %v5191_v6  ;;  %v5230_v6 = vld [vmem:[%s6552_s1 + $0x7c8] sm:$0xff]  }
  0xd6   :  { %4755 = vmatprep.subr.bf16.mxu1 %v5194_v9  ;;  %v5231_v9 = vld [vmem:[%s6552_s1 + $0x788] sm:$0xff]  }
  0xd7   :  { %4734 = vmatpush3.bf16.msra.mxu0 %v5193_v8  ;;  %v5232_v8 = vld [vmem:[%s6552_s1 + $0x740] sm:$0xff]  }
  0xd8   :  { %4735 = vmatprep.subr.bf16.mxu0 %v5196_v11  ;;  %v5233_v11 = vld [vmem:[%s6552_s1 + $0x700] sm:$0xff]  }
  0xd9   :  { %4756 = vmatpush3.bf16.msra.mxu1 %v5195_v10  ;;  %v5234_v10 = vld [vmem:[%s6552_s1 + $0x7c0] sm:$0xff]  }
  0xda   :  { %4757 = vmatprep.subr.bf16.mxu1 %v5198_v13  ;;  %v5237_v13 = vld [vmem:[%s6552_s1 + $0x878] sm:$0xff]  }
  0xdb   :  { %4736 = vmatpush3.bf16.msra.mxu0 %v5197_v16  ;;  %v5238_v16 = vld [vmem:[%s6552_s1 + $0x838] sm:$0xff]  }
  0xdc   :  { %4737 = vmatprep.subr.bf16.mxu0 %v5200_v17  ;;  %v920_v17 = vcombine.high %v904_v12, %v904_v12 }
  0xdd   :  { %4758 = vmatpush3.bf16.msra.mxu1 %v5199_v20 }
  0xde   :  { %4759 = vmatprep.subr.bf16.mxu1 %v5202_v21  ;;  %v5243_v21 = vld [vmem:[%s6552_s1 + $0x8f0] sm:$0xff]  }
  0xdf   :  { %4738 = vmatpush3.bf16.msra.mxu0 %v5201_v24 }
  0xe0   :  { %4767 = vmatprep.subr.bf16.mxu0 %v5204_v26 }
  0xe1   :  { %4760 = vmatpush3.bf16.msra.mxu1 %v5203_v28 }
  0xe2   :  { %v4475_v36 = vpop.f32.mrf.mxu0  ;;  %3612 = vmatmul.mubr.bf16.vlgmr.msra.gmra.mxu0 %v897_v25  ;;  %4789 = vmatprep.subr.bf16.mxu1 %v5206_v30  ;;  %v5245_v25 = vld [vmem:[%s6552_s1 + $0x868] sm:$0xff]  }
  0xe3   :  { %4768 = vmatpush3.bf16.msra.mxu0 %v5205_v31  ;;  %3691 = vmatprep.mubr.bf16.mxu0 %v918_v29  ;;  %v5247_v30 = vld [vmem:[%s6552_s1 + $0x8e8] sm:$0xff]  }
  0xe4   :  { %v4476_v40 = vpop.f32.mrf.mxu0  ;;  %v4497_v42 = vpop.f32.mrf.mxu1  ;;  %3652 = vmatmul.mubr.bf16.vlgmr.msra.gmra.mxu1 %v919_v32  ;;  %4769 = vmatprep.subr.bf16.mxu0 %v5208_v33  ;;  %v5246_v33 = vld [vmem:[%s6552_s1 + $0x828] sm:$0xff]  }
  0xe5   :  { %v4477_v44 = vadd.f32 %v4476_v40, %v4475_v36  ;;  %4790 = vmatpush3.bf16.msra.mxu1 %v5207_v34  ;;  %3731 = vmatprep.mubr.bf16.mxu1 %v922_v35  ;;  %v5249_v36 = vld [vmem:[%s6552_s1 + $0x860] sm:$0xff]  }
  0xe6   :  { %v4478_v46 = vpop.f32.mrf.mxu0  ;;  %v4498_v47 = vpop.f32.mrf.mxu1  ;;  %4791 = vmatprep.subr.bf16.mxu1 %v5210_v38  ;;  %v5248_v38 = vld [vmem:[%s6552_s1 + $0x8a8] sm:$0xff]   ;;  %v5251_v40 = vld [vmem:[%s6552_s1 + $0x8e0] sm:$0xff]  }
  0xe7   :  { %v3134_v49 = vadd.f32 %v4477_v44, %v4104_v37  ;;  %v4499_v50 = vadd.f32 %v4498_v47, %v4497_v42  ;;  %4770 = vmatpush3.bf16.msra.mxu0 %v5209_v39  ;;  %v5250_v42 = vld [vmem:[%s6552_s1 + $0x820] sm:$0xff]   ;;  %v5254_v46 = vld [vmem:[%s6552_s1 + $0x818] sm:$0xff]   ;;  %v5257_v47 = vld [vmem:[%s6552_s1 + $0x850] sm:$0xff]  }
  0xe8   :  { %v4479_v52 = vpop.f32.mrf.mxu0  ;;  %4771 = vmatprep.subr.bf16.mxu0 %v5212_v43  ;;  %v4500_v53 = vpop.f32.mrf.mxu1  ;;  %v5253_v43 = vld [vmem:[%s6552_s1 + $0x858] sm:$0xff]   ;;  %v5252_v44 = vld [vmem:[%s6552_s1 + $0x8a0] sm:$0xff]  }
  0xe9   :  { %v6155_v55 = vadd.f32 %v4499_v50, %v3134_v49  ;;  %4792 = vmatpush3.bf16.msra.mxu1 %v5211_v45  ;;  %v5255_v45 = vld [vmem:[%s6552_s1 + $0x8d8] sm:$0xff]   ;;  %v5259_v49 = vld [vmem:[%s6552_s1 + $0x8d0] sm:$0xff]   ;;  %v26_v53 = vld [vmem:[%s6551_s0 + $0x20] sm:$0xff] }
  0xea   :  { %4793 = vmatprep.subr.bf16.mxu1 %v5214_v48  ;;  %v4501_v57 = vpop.f32.mrf.mxu1  ;;  %v5256_v48 = vld [vmem:[%s6552_s1 + $0x898] sm:$0xff]   ;;  %v5258_v50 = vld [vmem:[%s6552_s1 + $0x810] sm:$0xff]  }
  0xeb   :  { %4772 = vmatpush3.bf16.msra.mxu0 %v5213_v51  ;;  %v5261_v51 = vld [vmem:[%s6552_s1 + $0x848] sm:$0xff]   ;;  %v5260_v52 = vld [vmem:[%s6552_s1 + $0x890] sm:$0xff]  }
  0xec   :  { %4773 = vmatprep.subr.bf16.mxu0 %v5216_v54  ;;  %v5263_v54 = vld [vmem:[%s6552_s1 + $0x8c8] sm:$0xff]  }
  0xed   :  { %4794 = vmatpush3.bf16.msra.mxu1 %v5215_v56  ;;  %v923_v56 = vcombine.high %v26_v53, %v26_v53  ;;  %v5262_v57 = vld [vmem:[%s6552_s1 + $0x808] sm:$0xff]  }
  0xee   :  { %4795 = vmatprep.subr.bf16.mxu1 %v5218_v58  ;;  %v5265_v58 = vld [vmem:[%s6552_s1 + $0x840] sm:$0xff]  }
  0xef   :  { %4774 = vmatpush3.bf16.msra.mxu0 %v5217_v59 }
  0xf0   :  { %4775 = vmatprep.subr.bf16.mxu0 %v5220_v60  ;;  %v6311_v60 = vrot.slane %v923_v56, %v5493_v41 }
  0xf1   :  { %4796 = vmatpush3.bf16.msra.mxu1 %v5219_v61  ;;  %v5264_v61 = vld [vmem:[%s6552_s1 + $0x888] sm:$0xff]  }
  0xf2   :  { %4797 = vmatprep.subr.bf16.mxu1 %v5222_v62  ;;  %v5267_v62 = vld [vmem:[%s6552_s1 + $0x8c0] sm:$0xff]  }
  0xf3   :  { %4776 = vmatpush3.bf16.msra.mxu0 %v5221_v63 }
  0xf4   :  { %4777 = vmatprep.subr.bf16.mxu0 %v5224_v0  ;;  %v939_v0 = vcombine.high %v6311_v60, %v6311_v60 }
  0xf5   :  { %4798 = vmatpush3.bf16.msra.mxu1 %v5223_v1  ;;  %v5266_v1 = vld [vmem:[%s6552_s1 + $0x800] sm:$0xff]  }
  0xf6   :  { %4799 = vmatprep.subr.bf16.mxu1 %v5226_v2 }
  0xf7   :  { %4778 = vmatpush3.bf16.msra.mxu0 %v5225_v3  ;;  %v5269_v3 = vld [vmem:[%s6552_s1 + $0x978] sm:$0xff]  }
  0xf8   :  { %4779 = vmatprep.subr.bf16.mxu0 %v5228_v4 }
  0xf9   :  { %4800 = vmatpush3.bf16.msra.mxu1 %v5227_v5  ;;  %v5268_v5 = vld [vmem:[%s6552_s1 + $0x880] sm:$0xff]  }
  0xfa   :  { %4801 = vmatprep.subr.bf16.mxu1 %v5230_v6  ;;  %v967_v6 = vrot.slane %v939_v0, %v5493_v41  ;;  %v5307_v0 = vld [vmem:[%s6552_s1 + $0xa68] sm:$0xff]  }
  0xfb   :  { %4780 = vmatpush3.bf16.msra.mxu0 %v5229_v7  ;;  %v5271_v7 = vld [vmem:[%s6552_s1 + $0x9f8] sm:$0xff]  }
  0xfc   :  { %4781 = vmatprep.subr.bf16.mxu0 %v5232_v8  ;;  %v5270_v8 = vld [vmem:[%s6552_s1 + $0x938] sm:$0xff]  }
  0xfd   :  { %4802 = vmatpush3.bf16.msra.mxu1 %v5231_v9 }
  0xfe   :  { %4803 = vmatprep.subr.bf16.mxu1 %v5234_v10  ;;  %v5273_v10 = vld [vmem:[%s6552_s1 + $0x970] sm:$0xff]  }
  0xff   :  { %4782 = vmatpush3.bf16.msra.mxu0 %v5233_v11  ;;  %v5272_v11 = vld [vmem:[%s6552_s1 + $0x9b8] sm:$0xff]  }
 0x100   :  { %4811 = vmatprep.subr.bf16.mxu0 %v5237_v13 }
 0x101   :  { %4804 = vmatpush3.bf16.msra.mxu1 %v5236_v14  ;;  %v5275_v14 = vld [vmem:[%s6552_s1 + $0x9f0] sm:$0xff]  }
 0x102   :  { %v4519_v20 = vpop.f32.mrf.mxu0  ;;  %3692 = vmatmul.mubr.bf16.vlgmr.msra.gmra.mxu0 %v904_v12  ;;  %4833 = vmatprep.subr.bf16.mxu1 %v5239_v15  ;;  %v971_v12 = vcombine.high %v967_v6, %v967_v6  ;;  %v5274_v15 = vld [vmem:[%s6552_s1 + $0x930] sm:$0xff]  }
 0x103   :  { %4812 = vmatpush3.bf16.msra.mxu0 %v5238_v16 }
 0x104   :  { %v4520_v23 = vpop.f32.mrf.mxu0  ;;  %v4541_v24 = vpop.f32.mrf.mxu1  ;;  %3732 = vmatmul.mubr.bf16.vlgmr.msra.gmra.mxu1 %v920_v17  ;;  %4813 = vmatprep.subr.bf16.mxu0 %v5241_v18  ;;  %v5277_v18 = vld [vmem:[%s6552_s1 + $0x968] sm:$0xff]  }
 0x105   :  { %v4521_v26 = vadd.f32 %v4520_v23, %v4519_v20  ;;  %4834 = vmatpush3.bf16.msra.mxu1 %v5240_v19  ;;  %v5276_v20 = vld [vmem:[%s6552_s1 + $0x9b0] sm:$0xff]   ;;  %v5279_v23 = vld [vmem:[%s6552_s1 + $0x9e8] sm:$0xff]  }
 0x106   :  { %v4522_v28 = vpop.f32.mrf.mxu0  ;;  %v4542_v29 = vpop.f32.mrf.mxu1  ;;  %4835 = vmatprep.subr.bf16.mxu1 %v5243_v21 }
 0x107   :  { %v3214_v31 = vadd.f32 %v4521_v26, %v6155_v55  ;;  %v4543_v32 = vadd.f32 %v4542_v29, %v4541_v24  ;;  %4814 = vmatpush3.bf16.msra.mxu0 %v5242_v22  ;;  %v930_v55 = vrot.slane %v26_v53, %v5493_v41  ;;  %v5278_v26 = vld [vmem:[%s6552_s1 + $0x928] sm:$0xff]   ;;  %v5281_v29 = vld [vmem:[%s6552_s1 + $0x960] sm:$0xff]   ;;  %v5302_v53 = vld [vmem:[%s6552_s1 + $0xa78] sm:$0xff]  }
 0x108   :  { %v4523_v34 = vpop.f32.mrf.mxu0  ;;  %4815 = vmatprep.subr.bf16.mxu0 %v5245_v25  ;;  %v4544_v35 = vpop.f32.mrf.mxu1 }
 0x109   :  { %v6256_v37 = vadd.f32 %v4543_v32, %v3214_v31  ;;  %4836 = vmatpush3.bf16.msra.mxu1 %v5244_v27  ;;  %v938_v59 = vcombine.high %v930_v55, %v930_v55  ;;  %v946_v2 = vrot.slane %v930_v55, %v5493_v41  ;;  %v5280_v31 = vld [vmem:[%s6552_s1 + $0x9a8] sm:$0xff]   ;;  %v5282_v34 = vld [vmem:[%s6552_s1 + $0x920] sm:$0xff]   ;;  %v5285_v35 = vld [vmem:[%s6552_s1 + $0x958] sm:$0xff]  }
 0x10a   :  { %4837 = vmatprep.subr.bf16.mxu1 %v5247_v30  ;;  %v4545_v39 = vpop.f32.mrf.mxu1  ;;  %v5303_v55 = vld [vmem:[%s6552_s1 + $0xa38] sm:$0xff]  }
 0x10b   :  { %4816 = vmatpush3.bf16.msra.mxu0 %v5246_v33  ;;  %v960_v63 = vrot.slane %v938_v59, %v5493_v41  ;;  %v968_v9 = vcombine.high %v946_v2, %v946_v2  ;;  %v5283_v33 = vld [vmem:[%s6552_s1 + $0x9e0] sm:$0xff]   ;;  %v5289_v39 = vld [vmem:[%s6552_s1 + $0x950] sm:$0xff]  }
 0x10c   :  { %4817 = vmatprep.subr.bf16.mxu0 %v5249_v36  ;;  %v5284_v36 = vld [vmem:[%s6552_s1 + $0x9a0] sm:$0xff]  }
 0x10d   :  { %4838 = vmatpush3.bf16.msra.mxu1 %v5248_v38  ;;  %3771 = vmatprep.mubr.bf16.mxu0 %v960_v63  ;;  %v970_v4 = vcombine.high %v960_v63, %v960_v63  ;;  %v5286_v38 = vld [vmem:[%s6552_s1 + $0x918] sm:$0xff]  }
 0x10e   :  { %4839 = vmatprep.subr.bf16.mxu1 %v5251_v40  ;;  %v5288_v40 = vld [vmem:[%s6552_s1 + $0x998] sm:$0xff]  }
 0x10f   :  { %4818 = vmatpush3.bf16.msra.mxu0 %v5250_v42  ;;  %3811 = vmatprep.mubr.bf16.mxu1 %v970_v4  ;;  %v5291_v42 = vld [vmem:[%s6552_s1 + $0x9d0] sm:$0xff]  }
 0x110   :  { %4819 = vmatprep.subr.bf16.mxu0 %v5253_v43  ;;  %v5290_v43 = vld [vmem:[%s6552_s1 + $0x910] sm:$0xff]  }
 0x111   :  { %4840 = vmatpush3.bf16.msra.mxu1 %v5252_v44  ;;  %v5293_v44 = vld [vmem:[%s6552_s1 + $0x948] sm:$0xff]  }
 0x112   :  { %4841 = vmatprep.subr.bf16.mxu1 %v5255_v45  ;;  %v5292_v45 = vld [vmem:[%s6552_s1 + $0x990] sm:$0xff]  }
 0x113   :  { %4820 = vmatpush3.bf16.msra.mxu0 %v5254_v46  ;;  %v5295_v46 = vld [vmem:[%s6552_s1 + $0x9c8] sm:$0xff]  }
 0x114   :  { %4821 = vmatprep.subr.bf16.mxu0 %v5257_v47  ;;  %v5294_v47 = vld [vmem:[%s6552_s1 + $0x908] sm:$0xff]  }
 0x115   :  { %4842 = vmatpush3.bf16.msra.mxu1 %v5256_v48  ;;  %v5297_v48 = vld [vmem:[%s6552_s1 + $0x940] sm:$0xff]  }
 0x116   :  { %4843 = vmatprep.subr.bf16.mxu1 %v5259_v49  ;;  %v5296_v49 = vld [vmem:[%s6552_s1 + $0x988] sm:$0xff]  }
 0x117   :  { %4822 = vmatpush3.bf16.msra.mxu0 %v5258_v50  ;;  %v5299_v50 = vld [vmem:[%s6552_s1 + $0x9c0] sm:$0xff]  }
 0x118   :  { %4823 = vmatprep.subr.bf16.mxu0 %v5261_v51  ;;  %v5298_v51 = vld [vmem:[%s6552_s1 + $0x900] sm:$0xff]  }
 0x119   :  { %4844 = vmatpush3.bf16.msra.mxu1 %v5260_v52  ;;  %v953_v52 = vrot.slane %v6311_v60, %v5493_v41  ;;  %v5355_v60 = vmov 0.0  }
 0x11a   :  { %4845 = vmatprep.subr.bf16.mxu1 %v5263_v54  ;;  %v5301_v54 = vld [vmem:[%s6552_s1 + $0x980] sm:$0xff]  }
 0x11b   :  { %4824 = vmatpush3.bf16.msra.mxu0 %v5262_v57  ;;  %v969_v56 = vcombine.high %v953_v52, %v953_v52  ;;  %v5304_v57 = vld [vmem:[%s6552_s1 + $0xa70] sm:$0xff]  }
 0x11c   :  { %4825 = vmatprep.subr.bf16.mxu0 %v5265_v58  ;;  %v5306_v58 = vld [vmem:[%s6552_s1 + $0xab0] sm:$0xff]  }
 0x11d   :  { %4846 = vmatpush3.bf16.msra.mxu1 %v5264_v61  ;;  %v5305_v61 = vld [vmem:[%s6552_s1 + $0xa30] sm:$0xff]  }
 0x11e   :  { %4847 = vmatprep.subr.bf16.mxu1 %v5267_v62 }
 0x11f   :  { %4826 = vmatpush3.bf16.msra.mxu0 %v5266_v1 }
 0x120   :  { %4855 = vmatprep.subr.bf16.mxu0 %v5269_v3 }
 0x121   :  { %4848 = vmatpush3.bf16.msra.mxu1 %v5268_v5 }
 0x122   :  { %v4563_v13 = vpop.f32.mrf.mxu0  ;;  %3772 = vmatmul.mubr.bf16.vlgmr.msra.gmra.mxu0 %v946_v2  ;;  %4877 = vmatprep.subr.bf16.mxu1 %v5271_v7  ;;  %v5309_v2 = vld [vmem:[%s6552_s1 + $0xaa8] sm:$0xff]  }
 0x123   :  { %4856 = vmatpush3.bf16.msra.mxu0 %v5270_v8  ;;  %3851 = vmatprep.mubr.bf16.mxu0 %v967_v6  ;;  %v5308_v7 = vld [vmem:[%s6552_s1 + $0xa28] sm:$0xff]  }
 0x124   :  { %v4564_v16 = vpop.f32.mrf.mxu0  ;;  %v4585_v17 = vpop.f32.mrf.mxu1  ;;  %3812 = vmatmul.mubr.bf16.vlgmr.msra.gmra.mxu1 %v968_v9  ;;  %4857 = vmatprep.subr.bf16.mxu0 %v5273_v10  ;;  %v5310_v10 = vld [vmem:[%s6552_s1 + $0xa60] sm:$0xff]  }
 0x125   :  { %v4565_v19 = vadd.f32 %v4564_v16, %v4563_v13  ;;  %4878 = vmatpush3.bf16.msra.mxu1 %v5272_v11  ;;  %3891 = vmatprep.mubr.bf16.mxu1 %v971_v12  ;;  %v5312_v12 = vld [vmem:[%s6552_s1 + $0xaa0] sm:$0xff]   ;;  %v5314_v16 = vld [vmem:[%s6552_s1 + $0xa18] sm:$0xff]  }
 0x126   :  { %v4566_v21 = vpop.f32.mrf.mxu0  ;;  %v4586_v22 = vpop.f32.mrf.mxu1  ;;  %4879 = vmatprep.subr.bf16.mxu1 %v5275_v14  ;;  %v5311_v14 = vld [vmem:[%s6552_s1 + $0xa20] sm:$0xff]  }
 0x127   :  { %v3294_v24 = vadd.f32 %v4565_v19, %v6256_v37  ;;  %v4587_v25 = vadd.f32 %v4586_v22, %v4585_v17  ;;  %4858 = vmatpush3.bf16.msra.mxu0 %v5274_v15  ;;  %v5287_v37 = vld [vmem:[%s6552_s1 + $0x9d8] sm:$0xff]   ;;  %v4105_v19 = vld.sshfl [vmem:[%s6551_s0 + $0x28] sm:$0x13 pattern:$0x75316420] }
 0x128   :  { %v4567_v27 = vpop.f32.mrf.mxu0  ;;  %4859 = vmatprep.subr.bf16.mxu0 %v5277_v18  ;;  %v4588_v28 = vpop.f32.mrf.mxu1  ;;  %v5313_v15 = vld [vmem:[%s6552_s1 + $0xa58] sm:$0xff]   ;;  %v5316_v18 = vld [vmem:[%s6552_s1 + $0xa50] sm:$0xff]   ;;  %v979_v21 = vcombine.high %v4105_v19, %v4105_v19 }
 0x129   :  { %v6367_v30 = vadd.f32 %v4587_v25, %v3294_v24  ;;  %4880 = vmatpush3.bf16.msra.mxu1 %v5276_v20  ;;  %v5315_v17 = vld [vmem:[%s6552_s1 + $0xa98] sm:$0xff]   ;;  %v5318_v20 = vld [vmem:[%s6552_s1 + $0xa90] sm:$0xff]  }
 0x12a   :  { %4881 = vmatprep.subr.bf16.mxu1 %v5279_v23  ;;  %v4589_v32 = vpop.f32.mrf.mxu1  ;;  %v993_v22 = vrot.slane %v979_v21, %v5493_v41  ;;  %v5317_v23 = vld [vmem:[%s6552_s1 + $0xa10] sm:$0xff]  }
 0x12b   :  { %4860 = vmatpush3.bf16.msra.mxu0 %v5278_v26 }
 0x12c   :  { %4861 = vmatprep.subr.bf16.mxu0 %v5281_v29 }
 0x12d   :  { %4882 = vmatpush3.bf16.msra.mxu1 %v5280_v31 }
 0x12e   :  { %4883 = vmatprep.subr.bf16.mxu1 %v5283_v33 }
 0x12f   :  { %4862 = vmatpush3.bf16.msra.mxu0 %v5282_v34 }
 0x130   :  { %4863 = vmatprep.subr.bf16.mxu0 %v5285_v35 }
 0x131   :  { %4884 = vmatpush3.bf16.msra.mxu1 %v5284_v36 }
 0x132   :  { %4885 = vmatprep.subr.bf16.mxu1 %v5287_v37 }
 0x133   :  { %4864 = vmatpush3.bf16.msra.mxu0 %v5286_v38 }
 0x134   :  { %4865 = vmatprep.subr.bf16.mxu0 %v5289_v39 }
 0x135   :  { %4886 = vmatpush3.bf16.msra.mxu1 %v5288_v40 }
 0x136   :  { %4887 = vmatprep.subr.bf16.mxu1 %v5291_v42 }
 0x137   :  { %4866 = vmatpush3.bf16.msra.mxu0 %v5290_v43 }
 0x138   :  { %4867 = vmatprep.subr.bf16.mxu0 %v5293_v44 }
 0x139   :  { %4888 = vmatpush3.bf16.msra.mxu1 %v5292_v45 }
 0x13a   :  { %4889 = vmatprep.subr.bf16.mxu1 %v5295_v46 }
 0x13b   :  { %4868 = vmatpush3.bf16.msra.mxu0 %v5294_v47 }
 0x13c   :  { %4869 = vmatprep.subr.bf16.mxu0 %v5297_v48 }
 0x13d   :  { %4890 = vmatpush3.bf16.msra.mxu1 %v5296_v49 }
 0x13e   :  { %4891 = vmatprep.subr.bf16.mxu1 %v5299_v50 }
 0x13f   :  { %4870 = vmatpush3.bf16.msra.mxu0 %v5298_v51 }
 0x140   :  { %4899 = vmatprep.subr.bf16.mxu0 %v5302_v53 }
 0x141   :  { %4892 = vmatpush3.bf16.msra.mxu1 %v5301_v54 }
 0x142   :  { %v4607_v59 = vpop.f32.mrf.mxu0  ;;  %3852 = vmatmul.mubr.bf16.vlgmr.msra.gmra.mxu0 %v953_v52  ;;  %4937 = vmatprep.subr.bf16.mxu1 %v5355_v60 }
 0x143   :  { %4900 = vmatpush3.bf16.msra.mxu0 %v5303_v55  ;;  %3931 = vmatprep.mubr.bf16.mxu0 %v993_v22 }
 0x144   :  { %v4608_v62 = vpop.f32.mrf.mxu0  ;;  %v4629_v63 = vpop.f32.mrf.mxu1  ;;  %3892 = vmatmul.mubr.bf16.vlgmr.msra.gmra.mxu1 %v969_v56  ;;  %4901 = vmatprep.subr.bf16.mxu0 %v5304_v57 }
 0x145   :  { %v4609_v1 = vadd.f32 %v4608_v62, %v4607_v59  ;;  %4938 = vmatpush3.bf16.msra.mxu1 %v5306_v58  ;;  %4951 = vmatprep.mubr.msk.bf16.mxu1 %vm5356_vm0, %v5355_v60 }
 0x146   :  { %v4610_v3 = vpop.f32.mrf.mxu0  ;;  %v4630_v4 = vpop.f32.mrf.mxu1  ;;  %4939 = vmatprep.subr.bf16.mxu1 %v5355_v60 }
 0x147   :  { %v3374_v5 = vadd.f32 %v4609_v1, %v6367_v30  ;;  %v4631_v6 = vadd.f32 %v4630_v4, %v4629_v63  ;;  %4902 = vmatpush3.bf16.msra.mxu0 %v5305_v61 }
 0x148   :  { %v4611_v8 = vpop.f32.mrf.mxu0  ;;  %4903 = vmatprep.subr.bf16.mxu0 %v5307_v0  ;;  %v4632_v9 = vpop.f32.mrf.mxu1 }
 0x149   :  { %v3414_v11 = vadd.f32 %v4631_v6, %v3374_v5  ;;  %4940 = vmatpush3.bf16.msra.mxu1 %v5309_v2 }
 0x14a   :  { %v4633_v13 = vpop.f32.mrf.mxu1  ;;  %4941 = vmatprep.subr.bf16.mxu1 %v5355_v60 }
 0x14b   :  { %4904 = vmatpush3.bf16.msra.mxu0 %v5308_v7 }
 0x14c   :  { %4905 = vmatprep.subr.bf16.mxu0 %v5310_v10 }
 0x14d   :  { %4942 = vmatpush3.bf16.msra.mxu1 %v5312_v12 }
 0x14e   :  { %4943 = vmatprep.subr.bf16.mxu1 %v5355_v60 }
 0x14f   :  { %4906 = vmatpush3.bf16.msra.mxu0 %v5311_v14 }
 0x150   :  { %4907 = vmatprep.subr.bf16.mxu0 %v5313_v15 }
 0x151   :  { %4944 = vmatpush3.bf16.msra.mxu1 %v5315_v17 }
 0x152   :  { %4945 = vmatprep.subr.bf16.mxu1 %v5355_v60 }
 0x153   :  { %4908 = vmatpush3.bf16.msra.mxu0 %v5314_v16 }
 0x154   :  { %10 = vsyncpa [#allocation3], 0  ;;  %4909 = vmatprep.subr.bf16.mxu0 %v5316_v18  ;;  %v5319_v24 = vld [vmem:[%s6552_s1 + $0xa48] sm:$0xff]   ;;  %v5322_v27 = vld [vmem:[%s6552_s1 + $0xa40] sm:$0xff]   ;;  %v986_v28 = vrot.slane %v4105_v19, %v5493_v41  ;;  %vm3095_vm1 = vcmask 916480   ;;  %vm4044_vm2 = vcmask 1041408  }
 0x155   :  { %4946 = vmatpush3.bf16.msra.mxu1 %v5318_v20  ;;  %v5321_v25 = vld [vmem:[%s6552_s1 + $0xa88] sm:$0xff]   ;;  %v5324_v29 = vld [vmem:[%s6552_s1 + $0xa80] sm:$0xff]   ;;  %v5325_v56 = vld [vmem:[%s6554_s3 + $0x30] ss:$0 sps:$4 sm:$0x33]   ;;  %vm4040_vm3 = vcmask 818176  }
 0x156   :  { %4947 = vmatprep.subr.bf16.mxu1 %v5355_v60  ;;  %v5320_v26 = vld [vmem:[%s6552_s1 + $0xa08] sm:$0xff]   ;;  %v5323_v30 = vld [vmem:[%s6552_s1 + $0xa00] sm:$0xff]   ;;  %v994_v31 = vcombine.high %v986_v28, %v986_v28  ;;  %v4046_v57 = vsel %vm4044_vm2, %v5325_v56, 0  ;;  %v5328_v61 = vld [vmem:[%s6554_s3 + $0x18] sm:$0xff]   ;;  %s5357_s21 = smov [#allocation2]   ;;  %vm4088_vm4 = vcmask 74752  }
 0x157   :  { %4910 = vmatpush3.bf16.msra.mxu0 %v5317_v23  ;;  %v5326_v58 = vld [vmem:[%s6554_s3 + $0x28] sm:$0xff]   ;;  %v5327_v59 = vld [vmem:[%s6554_s3 + $0x20] sm:$0xff]   ;;  %v5329_v63 = vld [vmem:[%s6554_s3 + $0x10] sm:$0xff]   ;;  %s4096_s0 = sshll.u32 %s5357_s21, 4  ;;  %s4097_s0 = int_to_ptr.vmem [resolvable:$true] %s4096_s0 }
 0x158   :  { %4911 = vmatprep.subr.bf16.mxu0 %v5319_v24  ;;  %v5330_v5 = vld [vmem:[%s6554_s3 + $0x8] sm:$0xff]   ;;  %v5331_v12 = vld [vmem:[%s6554_s3] sm:$0xff]   ;;  %s5332_s22 = scalar_lea.vmem %s4097_s0, 32  ;;  %p5337_p1 = scmp.lt.s32.totalorder %s4097_s0, %s4097_s0 }
 0x159   :  { %4948 = vmatpush3.bf16.msra.mxu1 %v5321_v25  ;;  %p5333_p0 = scmp.ne.s32.totalorder %s4097_s0, %s5332_s22  ;;  %p5338_p2 = scmp.lt.s32.totalorder %s5332_s22, %s5332_s22 }
 0x15a   :  { %4949 = vmatprep.subr.bf16.mxu1 %v5355_v60 }
 0x15b   :  { %4912 = vmatpush3.bf16.msra.mxu0 %v5320_v26  ;;  %p5339_p3 = por %p5338_p2, %p5337_p1 }
 0x15c   :  { %4913 = vmatprep.subr.bf16.mxu0 %v5322_v27 }
 0x15d   :  { %4950 = vmatpush3.bf16.msra.mxu1 %v5324_v29  ;;  %p5340_p4 = pnand %p5339_p3, %p5333_p0 }
 0x15e   :  { %4955 = vmatprep.subr.bf16.mxu1 %v5355_v60 }
 0x15f   :  { %4914 = vmatpush3.bf16.msra.mxu0 %v5323_v30 }
 0x160   :  { %4952 = vmatmul.mubr.msk.bf16.vlgmr.msra.gmra.mxu1 %vm3095_vm1, %v994_v31 }
 0x161   :  { %4969 = vmatprep.mubr.msk.bf16.mxu1 %vm5356_vm0, %v5355_v60  ;;  %4956 = vmatpush3.bf16.msra.mxu1 %v4046_v57 }
 0x162   :  { %v4651_v41 = vpop.f32.mrf.mxu0  ;;  %3932 = vmatmul.mubr.bf16.vlgmr.msra.gmra.mxu0 %v986_v28  ;;  %4957 = vmatprep.subr.bf16.mxu1 %v5355_v60 }
 0x164   :  { %v4652_v32 = vpop.f32.mrf.mxu0  ;;  %v4673_v33 = vpop.f32.mrf.mxu1 }
 0x165   :  { %v4653_v34 = vadd.f32 %v4652_v32, %v4651_v41  ;;  %4958 = vmatpush3.bf16.msra.mxu1 %v5326_v58 }
 0x166   :  { %v4654_v35 = vpop.f32.mrf.mxu0  ;;  %v4674_v36 = vpop.f32.mrf.mxu1  ;;  %4959 = vmatprep.subr.bf16.mxu1 %v5355_v60 }
 0x167   :  { %v3454_v37 = vadd.f32 %v4653_v34, %v3414_v11  ;;  %v4675_v38 = vadd.f32 %v4674_v36, %v4673_v33 }
 0x168   :  { %v4655_v39 = vpop.f32.mrf.mxu0  ;;  %v4676_v40 = vpop.f32.mrf.mxu1 }
 0x169   :  { %v3494_v42 = vadd.f32 %v4675_v38, %v3454_v37  ;;  %4960 = vmatpush3.bf16.msra.mxu1 %v5327_v59 }
 0x16a   :  { %v4677_v43 = vpop.f32.mrf.mxu1  ;;  %4961 = vmatprep.subr.bf16.mxu1 %v5355_v60 }
 0x16d   :  { %4962 = vmatpush3.bf16.msra.mxu1 %v5328_v61 }
 0x16e   :  { %4963 = vmatprep.subr.bf16.mxu1 %v5355_v60 }
 0x171   :  { %4964 = vmatpush3.bf16.msra.mxu1 %v5329_v63 }
 0x172   :  { %4965 = vmatprep.subr.bf16.mxu1 %v5355_v60 }
 0x175   :  { %4966 = vmatpush3.bf16.msra.mxu1 %v5330_v5 }
 0x176   :  { %4967 = vmatprep.subr.bf16.mxu1 %v5355_v60 }
 0x179   :  { %4968 = vmatpush3.bf16.msra.mxu1 %v5331_v12 }
 0x182   :  { %v4695_v44 = vpop.f32.mrf.mxu0 }
 0x184   :  { %v4696_v45 = vpop.f32.mrf.mxu0  ;;  %v4717_v46 = vpop.f32.mrf.mxu1 }
 0x185   :  { %v4697_v47 = vadd.f32 %v4696_v45, %v4695_v44 }
 0x186   :  { %v4698_v48 = vpop.f32.mrf.mxu0  ;;  %v4718_v49 = vpop.f32.mrf.mxu1 }
 0x187   :  { %v3534_v50 = vadd.f32 %v4697_v47, %v3494_v42  ;;  %v4719_v51 = vadd.f32 %v4718_v49, %v4717_v46 }
 0x188   :  { %v4699_v52 = vpop.f32.mrf.mxu0  ;;  %v4720_v53 = vpop.f32.mrf.mxu1 }
 0x189   :  { %v3574_v54 = vadd.f32 %v4719_v51, %v3534_v50 }
 0x18a   :  { %v4721_v55 = vpop.f32.mrf.mxu1 }
 0x1a2   :  { %v4739_v62 = vpop.f32.mrf.mxu0 }
 0x1a4   :  { %v4740_v0 = vpop.f32.mrf.mxu0  ;;  %v4761_v1 = vpop.f32.mrf.mxu1 }
 0x1a5   :  { %v4741_v2 = vadd.f32 %v4740_v0, %v4739_v62  ;;  %v4450_v62 = vld [vmem:[%s6555_s4] ss:$0 sm:$0xff] }
 0x1a6   :  { %v4742_v3 = vpop.f32.mrf.mxu0  ;;  %v4762_v4 = vpop.f32.mrf.mxu1 }
 0x1a7   :  { %v3614_v6 = vadd.f32 %v4741_v2, %v3574_v54  ;;  %v4763_v7 = vadd.f32 %v4762_v4, %v4761_v1 }
 0x1a8   :  { %v4743_v8 = vpop.f32.mrf.mxu0  ;;  %v4764_v9 = vpop.f32.mrf.mxu1 }
 0x1a9   :  { %v3654_v10 = vadd.f32 %v4763_v7, %v3614_v6 }
 0x1aa   :  { %v4765_v11 = vpop.f32.mrf.mxu1 }
 0x1c2   :  { %v4783_v13 = vpop.f32.mrf.mxu0 }
 0x1c4   :  { %v4784_v14 = vpop.f32.mrf.mxu0  ;;  %v4805_v15 = vpop.f32.mrf.mxu1 }
 0x1c5   :  { %v4785_v16 = vadd.f32 %v4784_v14, %v4783_v13 }
 0x1c6   :  { %v4786_v17 = vpop.f32.mrf.mxu0  ;;  %v4806_v18 = vpop.f32.mrf.mxu1 }
 0x1c7   :  { %v3694_v19 = vadd.f32 %v4785_v16, %v3654_v10  ;;  %v4807_v20 = vadd.f32 %v4806_v18, %v4805_v15 }
 0x1c8   :  { %v4787_v21 = vpop.f32.mrf.mxu0  ;;  %v4808_v22 = vpop.f32.mrf.mxu1 }
 0x1c9   :  { %v3734_v23 = vadd.f32 %v4807_v20, %v3694_v19 }
 0x1ca   :  { %v4809_v24 = vpop.f32.mrf.mxu1 }
 0x1e2   :  { %v4827_v25 = vpop.f32.mrf.mxu0 }
 0x1e4   :  { %v4828_v60 = vpop.f32.mrf.mxu0  ;;  %v4849_v26 = vpop.f32.mrf.mxu1 }
 0x1e5   :  { %v4829_v39 = vadd.f32 %v4828_v60, %v4827_v25 }
 0x1e6   :  { %v4830_v27 = vpop.f32.mrf.mxu0  ;;  %v4850_v28 = vpop.f32.mrf.mxu1 }
 0x1e7   :  { %v3774_v40 = vadd.f32 %v4829_v39, %v3734_v23  ;;  %v4851_v42 = vadd.f32 %v4850_v28, %v4849_v26 }
 0x1e8   :  { %v4831_v29 = vpop.f32.mrf.mxu0  ;;  %v4852_v30 = vpop.f32.mrf.mxu1 }
 0x1e9   :  { %v3814_v44 = vadd.f32 %v4851_v42, %v3774_v40 }
 0x1ea   :  { %v4853_v31 = vpop.f32.mrf.mxu1 }
 0x202   :  { %v4871_v41 = vpop.f32.mrf.mxu0 }
 0x204   :  { %v4872_v32 = vpop.f32.mrf.mxu0  ;;  %v4893_v33 = vpop.f32.mrf.mxu1 }
 0x205   :  { %v4873_v43 = vadd.f32 %v4872_v32, %v4871_v41 }
 0x206   :  { %v4874_v34 = vpop.f32.mrf.mxu0  ;;  %v4894_v35 = vpop.f32.mrf.mxu1 }
 0x207   :  { %v3854_v46 = vadd.f32 %v4873_v43, %v3814_v44  ;;  %v4895_v47 = vadd.f32 %v4894_v35, %v4893_v33 }
 0x208   :  { %v4875_v36 = vpop.f32.mrf.mxu0  ;;  %v4896_v37 = vpop.f32.mrf.mxu1 }
 0x209   :  { %v3894_v52 = vadd.f32 %v4895_v47, %v3854_v46 }
 0x20a   :  { %v4897_v38 = vpop.f32.mrf.mxu1 }
 0x220   :  { %v3973_v45 = vpop.f32.mrf.mxu1 }
 0x222   :  { %v4915_v48 = vpop.f32.mrf.mxu0  ;;  %v4953_v49 = vpop.f32.mrf.mxu1 }
 0x224   :  { %v4916_v50 = vpop.f32.mrf.mxu0  ;;  %v3976_v51 = vpop.f32.mrf.mxu1 }
 0x225   :  { %v4917_v53 = vadd.f32 %v4916_v50, %v4915_v48 }
 0x226   :  { %v4918_v54 = vpop.f32.mrf.mxu0  ;;  %v4954_v55 = vpop.f32.mrf.mxu1 }
 0x227   :  { %v3934_v56 = vadd.f32 %v4917_v53, %v3894_v52 }
 0x228   :  { %v4919_v57 = vpop.f32.mrf.mxu0 }
 0x229   :  { %v3974_v58 = vadd.f32 %v3973_v45, %v3934_v56 }
 0x22b   :  { %v3979_v59 = vmax.f32 %v3974_v58, 0.0 }
 0x22d   :  { %v3980_v61 = vpack.c.bf16 %v3979_v59, %v3979_v59 }
 0x22f   :  { %4970 = vmatmul.mubr.msk.bf16.vlgmr.msra.gmra.mxu1 %vm4040_vm3, %v3980_v61 }
 0x2ef   :  { %v4082_v63 = vpop.f32.mrf.mxu1 }
 0x2f0   :  { %v4083_v0 = vadd.f32 %v4450_v62, %v4082_v63 }
 0x2f1   :  { %v4971_v1 = vpop.f32.mrf.mxu1 }
 0x2f2   :  { %4089 = vst.msk [vmem:[#allocation2] sm:$0x3] %vm4088_vm4, %v4083_v0 }
 0x2f3   :  { %v4085_v2 = vpop.f32.mrf.mxu1 }
 0x2f4   :  { %5343 = shalt.err (!%p5340_p4)
}
 0x2f5   :  { %4099 = dma.vmem_to_hbm [thread:$0]  %s4097_s0, 32, %s6556_s5, [#allocation3]   ;;  %v4972_v3 = vpop.f32.mrf.mxu1 }
 0x2f6   :  { %5352 = dma.done.wait [#allocation3], 32  }
 0x2f7   :  { %5353 = vsyncadd [#allocation3], 4294967264 }
 0x2f8   :  { %4103 = vsyncpa [#allocation3], 1 }

</bundles_post_ra>
